<compile_context>
chip_gen: v7x
topology: tpu7x:2x2x1
jax: 0.10.0
libtpu: 0.0.40
codegen_flags: <defaults>
</compile_context>

<pallas_src>
import functools

import jax
import jax.numpy as jnp
from jax.experimental import pallas as pl
from jax.experimental.pallas import tpu as pltpu


# ----------------------------- args ---------------------------------------
class Args:
    vocab = 50
    CLSTM1_embed = 32
    CLSTM1_kernel = (3, 4, 5)   # even kernels get +1 (PyTorch code) -> (3, 5, 5)
    CLSTM1_filter = 8
    CLSTM1_lstm_layer = 1
    dropout = 0.1
    num_class = 4


# --------------------------- fused Pallas kernel ----------------------------
def _clstm1_kernel(*refs, T, N, H, C, n_layers):
    """Fused CLSTM1 forward.  All in-kernel activations are transposed:
    features on sublanes, samples (column index = t*N + n) on lanes."""
    xcT_ref, wcT_ref, bc_ref = refs[0], refs[1], refs[2]
    layer_refs = [refs[3 + 4 * l: 3 + 4 * (l + 1)] for l in range(n_layers)]
    wfT_ref, bf_ref, o_ref = refs[3 + 4 * n_layers:]

    G = 4 * H

    # 1) merged 3-branch conv as one matmul (+ bias + ReLU):
    #    (H, kmax*E) @ (kmax*E, T*N) -> (H, T*N)
    cnnT = jnp.dot(wcT_ref[...], xcT_ref[...], preferred_element_type=jnp.float32)
    cnnT = jnp.maximum(cnnT + bc_ref[...], 0.0)

    def _cell(gates, c_prev):
        # PyTorch gate order i, f, g, o; each slice is a free sublane block
        # (H is a multiple of 8).
        gi = jax.nn.sigmoid(gates[0 * H:1 * H, :])
        gf = jax.nn.sigmoid(gates[1 * H:2 * H, :])
        gg = jnp.tanh(gates[2 * H:3 * H, :])
        go = jax.nn.sigmoid(gates[3 * H:4 * H, :])
        c_new = gf * c_prev + gi * gg
        return go * jnp.tanh(c_new), c_new

    xT = cnnT                       # (feat, T*N) input of the current LSTM layer
    out_cols = None                 # list of per-time (2H, N) bi-LSTM outputs
    for li, (wiT_ref, bi_ref, whfT_ref, whbT_ref) in enumerate(layer_refs):
        # 2) fused fwd+bwd input projection: (8H, feat) @ (feat, T*N) -> (8H, T*N)
        xwT = jnp.dot(wiT_ref[...], xT, preferred_element_type=jnp.float32) + bi_ref[...]
        xwT_f = xwT[:G, :]          # sublane-aligned direction split (4H = 12*8)
        xwT_b = xwT[G:, :]
        wh_f = whfT_ref[...]        # (4H, H)  -- native PyTorch weight_hh layout
        wh_b = whbT_ref[...]

        zeros = jnp.zeros((H, N), jnp.float32)
        h_f, c_f, h_b, c_b = zeros, zeros, zeros, zeros
        hs_f = [None] * T
        hs_b = [None] * T

        # 3) fully unrolled recurrence (T == original batch, tiny).  Forward
        #    step t and backward step T-1-t are independent; both MXU dots are
        #    issued before either state update so they can overlap.
        for t in range(T):
            tb = T - 1 - t
            g_f = xwT_f[:, t * N:(t + 1) * N] + jnp.dot(
                wh_f, h_f, preferred_element_type=jnp.float32)
            g_b = xwT_b[:, tb * N:(tb + 1) * N] + jnp.dot(
                wh_b, h_b, preferred_element_type=jnp.float32)
            h_f, c_f = _cell(g_f, c_f)
            h_b, c_b = _cell(g_b, c_b)
            hs_f[t] = h_f
            hs_b[tb] = h_b

        # bidirectional concat along the feature (sublane) axis -> (2H, N) per t
        out_cols = [jnp.concatenate([hs_f[t], hs_b[t]], axis=0) for t in range(T)]
        if li + 1 < n_layers:
            xT = jnp.concatenate(out_cols, axis=1)   # (2H, T*N) next-layer input

    # 4) tanh -> max-pool over seq (lane reduce) -> hidden2label, all fused.
    pooled = [jnp.max(jnp.tanh(col), axis=1, keepdims=True) for col in out_cols]
    pooledT = jnp.concatenate(pooled, axis=1)                        # (2H, B)
    logitsT = jnp.dot(wfT_ref[...], pooledT,
                      preferred_element_type=jnp.float32) + bf_ref[...]
    o_ref[...] = logitsT.astype(o_ref.dtype)                          # (C, B)


# ----------------------------- forward wrapper ------------------------------
def clstm1_forward(ids, params, *, KK, H, num_class):
    B, S = ids.shape
    E = params["embed"].shape[1]
    F = params["conv_b_0"].shape[0]
    kmax = max(KK)
    n_layers = len(params["lstm"])
    # nn.LSTM (batch_first=False) quirk: time axis == original batch axis,
    # "batch" axis == original seq_len.  Reproduced exactly.
    T, N, C = B, S, num_class

    # ---------------- plain-JAX glue (tiny, one-time layout prep) ----------
    x = jnp.take(params["embed"], ids, axis=0)                       # (B, S, E)
    # self.dropout(embeds): identity in eval mode.
    pw = kmax // 2
    xp = jnp.pad(x, ((0, 0), (pw, pw), (0, 0)))
    cols = jnp.stack([xp[:, j:j + S, :] for j in range(kmax)], axis=2)  # (B,S,kmax,E)
    xcT = cols.reshape(B * S, kmax * E).T                            # (kmax*E, B*S)

    # Merge the conv branches: zero-pad each kernel into the kmax tap window
    # and concatenate filters -> one weight that yields concat(conv outputs).
    wc_blocks, bc_blocks = [], []
    for i, k in enumerate(KK):
        w = params[f"conv_w_{i}"][:, 0]                              # (F, k, E)
        off = (kmax - k) // 2
        wpad = jnp.pad(w, ((0, 0), (off, kmax - k - off), (0, 0)))   # (F, kmax, E)
        wc_blocks.append(wpad.reshape(F, kmax * E))
        bc_blocks.append(params[f"conv_b_{i}"])
    wcT = jnp.concatenate(wc_blocks, axis=0)                         # (H, kmax*E)
    bc = jnp.concatenate(bc_blocks, axis=0).reshape(-1, 1)           # (H, 1)

    # Per-layer LSTM weights: stack fwd+bwd input projections into one matmul.
    layer_args = []
    for layer in params["lstm"]:
        wiT = jnp.concatenate([layer["fwd"]["w_ih"], layer["bwd"]["w_ih"]], axis=0)
        bi = jnp.concatenate([layer["fwd"]["b"], layer["bwd"]["b"]], axis=0).reshape(-1, 1)
        layer_args += [wiT, bi, layer["fwd"]["w_hh"], layer["bwd"]["w_hh"]]

    wfT = params["fc_w"]                                             # (C, 2H)
    bf = params["fc_b"].reshape(-1, 1)                               # (C, 1)

    operands = [xcT, wcT, bc] + layer_args + [wfT, bf]
    operands = [a.astype(jnp.float32) for a in operands]

    # ---------------- one fused pallas_call --------------------------------
    idx0 = lambda i: (0, 0)
    in_specs = [pl.BlockSpec(a.shape, idx0) for a in operands]

    # Advisory cost hint for the XLA scheduler around the custom call.
    flops = 2 * H * (kmax * E) * (B * S) + 2 * C * (2 * H) * B
    feat = H
    for _ in range(n_layers):
        flops += 2 * (8 * H) * feat * (B * S) + 2 * 2 * T * (4 * H) * H * N
        feat = 2 * H
    trans = n_layers * 2 * T * 5 * H * N + 2 * H * N * T
    bytes_accessed = sum(a.size * a.dtype.itemsize for a in operands) + C * B * 4

    kernel = functools.partial(_clstm1_kernel, T=T, N=N, H=H, C=C, n_layers=n_layers)
    logitsT = pl.pallas_call(
        kernel,
        out_shape=jax.ShapeDtypeStruct((C, B), jnp.float32),
        grid=(1,),
        in_specs=in_specs,
        out_specs=pl.BlockSpec((C, B), idx0),
        compiler_params=pltpu.CompilerParams(dimension_semantics=("arbitrary",)),
        cost_estimate=pl.CostEstimate(flops=flops, transcendentals=trans,
                                      bytes_accessed=bytes_accessed),
    )(*operands)
    return logitsT.T                                                 # (B, num_class)


# ----------------------------- params ---------------------------------------
def init_params(key, args):
    KK = [k + 1 if k % 2 == 0 else k for k in args.CLSTM1_kernel]
    H = args.CLSTM1_filter * len(args.CLSTM1_kernel)
    keys = iter(jax.random.split(key, 64))
    p = {}
    p["embed"] = 0.1 * jax.random.normal(
        next(keys), (args.vocab, args.CLSTM1_embed), jnp.float32)
    for i, k in enumerate(KK):
        p[f"conv_w_{i}"] = 0.1 * jax.random.normal(
            next(keys), (args.CLSTM1_filter, 1, k, args.CLSTM1_embed), jnp.float32)
        p[f"conv_b_{i}"] = 0.1 * jax.random.normal(
            next(keys), (args.CLSTM1_filter,), jnp.float32)
    layers = []
    feat_in = H
    for _ in range(args.CLSTM1_lstm_layer):
        layer = {}
        for d in ("fwd", "bwd"):
            layer[d] = dict(
                # native PyTorch orientations: weight_ih (4H, in), weight_hh (4H, H)
                w_ih=0.1 * jax.random.normal(next(keys), (4 * H, feat_in), jnp.float32),
                w_hh=0.1 * jax.random.normal(next(keys), (4 * H, H), jnp.float32),
                # b must equal b_ih + b_hh when porting real PyTorch weights
                b=0.1 * jax.random.normal(next(keys), (4 * H,), jnp.float32),
            )
        layers.append(layer)
        feat_in = 2 * H
    p["lstm"] = layers
    p["fc_w"] = 0.1 * jax.random.normal(next(keys), (args.num_class, 2 * H), jnp.float32)
    p["fc_b"] = 0.1 * jax.random.normal(next(keys), (args.num_class,), jnp.float32)
    return p, KK, H


# ----------------------------- pure-JAX reference ----------------------------
def clstm1_reference(ids, params, *, KK, H):
    x = jnp.take(params["embed"], ids, axis=0)                       # (B, S, E)
    B, S, _ = x.shape
    feats = []
    for i, k in enumerate(KK):
        w = params[f"conv_w_{i}"][:, 0]                              # (F, k, E)
        b = params[f"conv_b_{i}"]
        pd = k // 2
        xp = jnp.pad(x, ((0, 0), (pd, pd), (0, 0)))
        cols = jnp.stack([xp[:, j:j + S, :] for j in range(k)], axis=2)
        feats.append(jax.nn.relu(jnp.einsum("bske,fke->bsf", cols, w) + b))
    out = jnp.concatenate(feats, axis=-1)                            # (T=B, N=S, H)

    for layer in params["lstm"]:
        T, N, _ = out.shape

        def run(direction, seq):
            w_ih = layer[direction]["w_ih"]
            w_hh = layer[direction]["w_hh"]
            b = layer[direction]["b"]
            h = jnp.zeros((N, H), jnp.float32)
            c = jnp.zeros((N, H), jnp.float32)
            hs = []
            for t in range(T):
                g = seq[t] @ w_ih.T + h @ w_hh.T + b
                gi = jax.nn.sigmoid(g[:, 0 * H:1 * H])
                gf = jax.nn.sigmoid(g[:, 1 * H:2 * H])
                gg = jnp.tanh(g[:, 2 * H:3 * H])
                go = jax.nn.sigmoid(g[:, 3 * H:4 * H])
                c = gf * c + gi * gg
                h = go * jnp.tanh(c)
                hs.append(h)
            return jnp.stack(hs, axis=0)

        h_f = run("fwd", out)
        h_b = run("bwd", out[::-1])[::-1]
        out = jnp.concatenate([h_f, h_b], axis=-1)                   # (T, N, 2H)

    pooled = jnp.max(jnp.tanh(out), axis=1)                          # (B, 2H)
    return pooled @ params["fc_w"].T + params["fc_b"]                # (B, C)


# ------------------------------- main ---------------------------------------
if __name__ == "__main__":
    args = Args()
    key = jax.random.PRNGKey(0)
    pkey, dkey = jax.random.split(key)
    params, KK, H = init_params(pkey, args)

    B, S = 2, 16
    ids = jax.random.randint(dkey, (B, S), 0, args.vocab, dtype=jnp.int32)

    fwd = jax.jit(functools.partial(clstm1_forward, KK=KK, H=H,
                                    num_class=args.num_class))
    logits = fwd(ids, params)
    logits = jax.block_until_ready(logits)

    assert logits.shape == (B, args.num_class), logits.shape
    assert bool(jnp.all(jnp.isfinite(logits)))

    ref = clstm1_reference(ids, params, KK=KK, H=H)
    assert bool(jnp.allclose(logits, ref, atol=2e-2, rtol=2e-2))

    print("KERNEL_OK")
</pallas_src>

<mosaic_0001>
module attributes {stable_mosaic.version = 11 : i64} {
  func.func @_clstm1_kernel(%arg0: i32, %arg1: memref<160x32xf32, #tpu.memory_space<vmem>>, %arg2: memref<24x160xf32, #tpu.memory_space<vmem>>, %arg3: memref<24x1xf32, #tpu.memory_space<vmem>>, %arg4: memref<192x24xf32, #tpu.memory_space<vmem>>, %arg5: memref<192x1xf32, #tpu.memory_space<vmem>>, %arg6: memref<96x24xf32, #tpu.memory_space<vmem>>, %arg7: memref<96x24xf32, #tpu.memory_space<vmem>>, %arg8: memref<4x48xf32, #tpu.memory_space<vmem>>, %arg9: memref<4x1xf32, #tpu.memory_space<vmem>>, %arg10: memref<4x2xf32, #tpu.memory_space<vmem>>) attributes {dimension_semantics = [#tpu.dimension_semantics<arbitrary>], iteration_bounds = array<i64: 1>, scalar_prefetch = 0 : i64, scratch_operands = 0 : i64, tpu.core_type = #tpu.core_type<tc>, window_params = [{pipeline_mode = #tpu.pipeline_mode<synchronous>, transform_indices = @transform_0, window_bounds = array<i64: 160, 32>}, {pipeline_mode = #tpu.pipeline_mode<synchronous>, transform_indices = @transform_1, window_bounds = array<i64: 24, 160>}, {pipeline_mode = #tpu.pipeline_mode<synchronous>, transform_indices = @transform_2, window_bounds = array<i64: 24, 1>}, {pipeline_mode = #tpu.pipeline_mode<synchronous>, transform_indices = @transform_3, window_bounds = array<i64: 192, 24>}, {pipeline_mode = #tpu.pipeline_mode<synchronous>, transform_indices = @transform_4, window_bounds = array<i64: 192, 1>}, {pipeline_mode = #tpu.pipeline_mode<synchronous>, transform_indices = @transform_5, window_bounds = array<i64: 96, 24>}, {pipeline_mode = #tpu.pipeline_mode<synchronous>, transform_indices = @transform_6, window_bounds = array<i64: 96, 24>}, {pipeline_mode = #tpu.pipeline_mode<synchronous>, transform_indices = @transform_7, window_bounds = array<i64: 4, 48>}, {pipeline_mode = #tpu.pipeline_mode<synchronous>, transform_indices = @transform_8, window_bounds = array<i64: 4, 1>}, {pipeline_mode = #tpu.pipeline_mode<synchronous>, transform_indices = @transform_9, window_bounds = array<i64: 4, 2>}]} {
    %c0 = arith.constant 0 : index
    %c0_0 = arith.constant 0 : index
    %0 = vector.load %arg2[%c0, %c0_0] : memref<24x160xf32, #tpu.memory_space<vmem>>, vector<24x160xf32>
    %c0_1 = arith.constant 0 : index
    %c0_2 = arith.constant 0 : index
    %1 = vector.load %arg1[%c0_1, %c0_2] : memref<160x32xf32, #tpu.memory_space<vmem>>, vector<160x32xf32>
    %cst = arith.constant dense<0.000000e+00> : vector<24x32xf32>
    %2 = tpu.matmul %0, %1, %cst {dimension_numbers = #tpu.dot_dimension_numbers<[1], [0], [0], [1], [0, 0, 1, 1], [], []>} : vector<24x160xf32>, vector<160x32xf32>, vector<24x32xf32> -> vector<24x32xf32>
    %c0_3 = arith.constant 0 : index
    %c0_4 = arith.constant 0 : index
    %3 = vector.load %arg3[%c0_3, %c0_4] : memref<24x1xf32, #tpu.memory_space<vmem>>, vector<24x1xf32>
    %4 = vector.broadcast %3 : vector<24x1xf32> to vector<24x32xf32>
    %5 = arith.addf %2, %4 : vector<24x32xf32>
    %cst_5 = arith.constant 0.000000e+00 : f32
    %6 = vector.broadcast %cst_5 : f32 to vector<24x32xf32>
    %7 = arith.maximumf %5, %6 : vector<24x32xf32>
    %c0_6 = arith.constant 0 : index
    %c0_7 = arith.constant 0 : index
    %8 = vector.load %arg4[%c0_6, %c0_7] : memref<192x24xf32, #tpu.memory_space<vmem>>, vector<192x24xf32>
    %cst_8 = arith.constant dense<0.000000e+00> : vector<192x32xf32>
    %9 = tpu.matmul %8, %7, %cst_8 {dimension_numbers = #tpu.dot_dimension_numbers<[1], [0], [0], [1], [0, 0, 1, 1], [], []>} : vector<192x24xf32>, vector<24x32xf32>, vector<192x32xf32> -> vector<192x32xf32>
    %c0_9 = arith.constant 0 : index
    %c0_10 = arith.constant 0 : index
    %10 = vector.load %arg5[%c0_9, %c0_10] : memref<192x1xf32, #tpu.memory_space<vmem>>, vector<192x1xf32>
    %11 = vector.broadcast %10 : vector<192x1xf32> to vector<192x32xf32>
    %12 = arith.addf %9, %11 : vector<192x32xf32>
    %13 = vector.extract_strided_slice %12 {offsets = [0, 0], sizes = [96, 32], strides = [1, 1]} : vector<192x32xf32> to vector<96x32xf32>
    %14 = vector.extract_strided_slice %12 {offsets = [96, 0], sizes = [96, 32], strides = [1, 1]} : vector<192x32xf32> to vector<96x32xf32>
    %c0_11 = arith.constant 0 : index
    %c0_12 = arith.constant 0 : index
    %15 = vector.load %arg6[%c0_11, %c0_12] : memref<96x24xf32, #tpu.memory_space<vmem>>, vector<96x24xf32>
    %c0_13 = arith.constant 0 : index
    %c0_14 = arith.constant 0 : index
    %16 = vector.load %arg7[%c0_13, %c0_14] : memref<96x24xf32, #tpu.memory_space<vmem>>, vector<96x24xf32>
    %cst_15 = arith.constant 0.000000e+00 : f32
    %17 = vector.broadcast %cst_15 : f32 to vector<24x16xf32>
    %18 = vector.extract_strided_slice %13 {offsets = [0, 0], sizes = [96, 16], strides = [1, 1]} : vector<96x32xf32> to vector<96x16xf32>
    %cst_16 = arith.constant dense<0.000000e+00> : vector<96x16xf32>
    %19 = tpu.matmul %15, %17, %cst_16 {dimension_numbers = #tpu.dot_dimension_numbers<[1], [0], [0], [1], [0, 0, 1, 1], [], []>} : vector<96x24xf32>, vector<24x16xf32>, vector<96x16xf32> -> vector<96x16xf32>
    %20 = arith.addf %18, %19 : vector<96x16xf32>
    %21 = vector.extract_strided_slice %14 {offsets = [0, 16], sizes = [96, 16], strides = [1, 1]} : vector<96x32xf32> to vector<96x16xf32>
    %cst_17 = arith.constant dense<0.000000e+00> : vector<96x16xf32>
    %22 = tpu.matmul %16, %17, %cst_17 {dimension_numbers = #tpu.dot_dimension_numbers<[1], [0], [0], [1], [0, 0, 1, 1], [], []>} : vector<96x24xf32>, vector<24x16xf32>, vector<96x16xf32> -> vector<96x16xf32>
    %23 = arith.addf %21, %22 : vector<96x16xf32>
    %24 = vector.extract_strided_slice %20 {offsets = [0, 0], sizes = [24, 16], strides = [1, 1]} : vector<96x16xf32> to vector<24x16xf32>
    %25 = arith.negf %24 : vector<24x16xf32>
    %26 = math.exp %25 : vector<24x16xf32>
    %cst_18 = arith.constant 1.000000e+00 : f32
    %27 = vector.broadcast %cst_18 : f32 to vector<24x16xf32>
    %28 = arith.addf %27, %26 : vector<24x16xf32>
    %29 = arith.divf %27, %28 : vector<24x16xf32>
    %30 = vector.extract_strided_slice %20 {offsets = [24, 0], sizes = [24, 16], strides = [1, 1]} : vector<96x16xf32> to vector<24x16xf32>
    %31 = arith.negf %30 : vector<24x16xf32>
    %32 = math.exp %31 : vector<24x16xf32>
    %cst_19 = arith.constant 1.000000e+00 : f32
    %33 = vector.broadcast %cst_19 : f32 to vector<24x16xf32>
    %34 = arith.addf %33, %32 : vector<24x16xf32>
    %35 = arith.divf %33, %34 : vector<24x16xf32>
    %36 = vector.extract_strided_slice %20 {offsets = [48, 0], sizes = [24, 16], strides = [1, 1]} : vector<96x16xf32> to vector<24x16xf32>
    %37 = math.tanh %36 : vector<24x16xf32>
    %38 = vector.extract_strided_slice %20 {offsets = [72, 0], sizes = [24, 16], strides = [1, 1]} : vector<96x16xf32> to vector<24x16xf32>
    %39 = arith.negf %38 : vector<24x16xf32>
    %40 = math.exp %39 : vector<24x16xf32>
    %cst_20 = arith.constant 1.000000e+00 : f32
    %41 = vector.broadcast %cst_20 : f32 to vector<24x16xf32>
    %42 = arith.addf %41, %40 : vector<24x16xf32>
    %43 = arith.divf %41, %42 : vector<24x16xf32>
    %44 = arith.mulf %35, %17 : vector<24x16xf32>
    %45 = arith.mulf %29, %37 : vector<24x16xf32>
    %46 = arith.addf %44, %45 : vector<24x16xf32>
    %47 = math.tanh %46 : vector<24x16xf32>
    %48 = arith.mulf %43, %47 : vector<24x16xf32>
    %49 = vector.extract_strided_slice %23 {offsets = [0, 0], sizes = [24, 16], strides = [1, 1]} : vector<96x16xf32> to vector<24x16xf32>
    %50 = arith.negf %49 : vector<24x16xf32>
    %51 = math.exp %50 : vector<24x16xf32>
    %cst_21 = arith.constant 1.000000e+00 : f32
    %52 = vector.broadcast %cst_21 : f32 to vector<24x16xf32>
    %53 = arith.addf %52, %51 : vector<24x16xf32>
    %54 = arith.divf %52, %53 : vector<24x16xf32>
    %55 = vector.extract_strided_slice %23 {offsets = [24, 0], sizes = [24, 16], strides = [1, 1]} : vector<96x16xf32> to vector<24x16xf32>
    %56 = arith.negf %55 : vector<24x16xf32>
    %57 = math.exp %56 : vector<24x16xf32>
    %cst_22 = arith.constant 1.000000e+00 : f32
    %58 = vector.broadcast %cst_22 : f32 to vector<24x16xf32>
    %59 = arith.addf %58, %57 : vector<24x16xf32>
    %60 = arith.divf %58, %59 : vector<24x16xf32>
    %61 = vector.extract_strided_slice %23 {offsets = [48, 0], sizes = [24, 16], strides = [1, 1]} : vector<96x16xf32> to vector<24x16xf32>
    %62 = math.tanh %61 : vector<24x16xf32>
    %63 = vector.extract_strided_slice %23 {offsets = [72, 0], sizes = [24, 16], strides = [1, 1]} : vector<96x16xf32> to vector<24x16xf32>
    %64 = arith.negf %63 : vector<24x16xf32>
    %65 = math.exp %64 : vector<24x16xf32>
    %cst_23 = arith.constant 1.000000e+00 : f32
    %66 = vector.broadcast %cst_23 : f32 to vector<24x16xf32>
    %67 = arith.addf %66, %65 : vector<24x16xf32>
    %68 = arith.divf %66, %67 : vector<24x16xf32>
    %69 = arith.mulf %60, %17 : vector<24x16xf32>
    %70 = arith.mulf %54, %62 : vector<24x16xf32>
    %71 = arith.addf %69, %70 : vector<24x16xf32>
    %72 = math.tanh %71 : vector<24x16xf32>
    %73 = arith.mulf %68, %72 : vector<24x16xf32>
    %74 = vector.extract_strided_slice %13 {offsets = [0, 16], sizes = [96, 16], strides = [1, 1]} : vector<96x32xf32> to vector<96x16xf32>
    %cst_24 = arith.constant dense<0.000000e+00> : vector<96x16xf32>
    %75 = tpu.matmul %15, %48, %cst_24 {dimension_numbers = #tpu.dot_dimension_numbers<[1], [0], [0], [1], [0, 0, 1, 1], [], []>} : vector<96x24xf32>, vector<24x16xf32>, vector<96x16xf32> -> vector<96x16xf32>
    %76 = arith.addf %74, %75 : vector<96x16xf32>
    %77 = vector.extract_strided_slice %14 {offsets = [0, 0], sizes = [96, 16], strides = [1, 1]} : vector<96x32xf32> to vector<96x16xf32>
    %cst_25 = arith.constant dense<0.000000e+00> : vector<96x16xf32>
    %78 = tpu.matmul %16, %73, %cst_25 {dimension_numbers = #tpu.dot_dimension_numbers<[1], [0], [0], [1], [0, 0, 1, 1], [], []>} : vector<96x24xf32>, vector<24x16xf32>, vector<96x16xf32> -> vector<96x16xf32>
    %79 = arith.addf %77, %78 : vector<96x16xf32>
    %80 = vector.extract_strided_slice %76 {offsets = [0, 0], sizes = [24, 16], strides = [1, 1]} : vector<96x16xf32> to vector<24x16xf32>
    %81 = arith.negf %80 : vector<24x16xf32>
    %82 = math.exp %81 : vector<24x16xf32>
    %cst_26 = arith.constant 1.000000e+00 : f32
    %83 = vector.broadcast %cst_26 : f32 to vector<24x16xf32>
    %84 = arith.addf %83, %82 : vector<24x16xf32>
    %85 = arith.divf %83, %84 : vector<24x16xf32>
    %86 = vector.extract_strided_slice %76 {offsets = [24, 0], sizes = [24, 16], strides = [1, 1]} : vector<96x16xf32> to vector<24x16xf32>
    %87 = arith.negf %86 : vector<24x16xf32>
    %88 = math.exp %87 : vector<24x16xf32>
    %cst_27 = arith.constant 1.000000e+00 : f32
    %89 = vector.broadcast %cst_27 : f32 to vector<24x16xf32>
    %90 = arith.addf %89, %88 : vector<24x16xf32>
    %91 = arith.divf %89, %90 : vector<24x16xf32>
    %92 = vector.extract_strided_slice %76 {offsets = [48, 0], sizes = [24, 16], strides = [1, 1]} : vector<96x16xf32> to vector<24x16xf32>
    %93 = math.tanh %92 : vector<24x16xf32>
    %94 = vector.extract_strided_slice %76 {offsets = [72, 0], sizes = [24, 16], strides = [1, 1]} : vector<96x16xf32> to vector<24x16xf32>
    %95 = arith.negf %94 : vector<24x16xf32>
    %96 = math.exp %95 : vector<24x16xf32>
    %cst_28 = arith.constant 1.000000e+00 : f32
    %97 = vector.broadcast %cst_28 : f32 to vector<24x16xf32>
    %98 = arith.addf %97, %96 : vector<24x16xf32>
    %99 = arith.divf %97, %98 : vector<24x16xf32>
    %100 = arith.mulf %91, %46 : vector<24x16xf32>
    %101 = arith.mulf %85, %93 : vector<24x16xf32>
    %102 = arith.addf %100, %101 : vector<24x16xf32>
    %103 = math.tanh %102 : vector<24x16xf32>
    %104 = arith.mulf %99, %103 : vector<24x16xf32>
    %105 = vector.extract_strided_slice %79 {offsets = [0, 0], sizes = [24, 16], strides = [1, 1]} : vector<96x16xf32> to vector<24x16xf32>
    %106 = arith.negf %105 : vector<24x16xf32>
    %107 = math.exp %106 : vector<24x16xf32>
    %cst_29 = arith.constant 1.000000e+00 : f32
    %108 = vector.broadcast %cst_29 : f32 to vector<24x16xf32>
    %109 = arith.addf %108, %107 : vector<24x16xf32>
    %110 = arith.divf %108, %109 : vector<24x16xf32>
    %111 = vector.extract_strided_slice %79 {offsets = [24, 0], sizes = [24, 16], strides = [1, 1]} : vector<96x16xf32> to vector<24x16xf32>
    %112 = arith.negf %111 : vector<24x16xf32>
    %113 = math.exp %112 : vector<24x16xf32>
    %cst_30 = arith.constant 1.000000e+00 : f32
    %114 = vector.broadcast %cst_30 : f32 to vector<24x16xf32>
    %115 = arith.addf %114, %113 : vector<24x16xf32>
    %116 = arith.divf %114, %115 : vector<24x16xf32>
    %117 = vector.extract_strided_slice %79 {offsets = [48, 0], sizes = [24, 16], strides = [1, 1]} : vector<96x16xf32> to vector<24x16xf32>
    %118 = math.tanh %117 : vector<24x16xf32>
    %119 = vector.extract_strided_slice %79 {offsets = [72, 0], sizes = [24, 16], strides = [1, 1]} : vector<96x16xf32> to vector<24x16xf32>
    %120 = arith.negf %119 : vector<24x16xf32>
    %121 = math.exp %120 : vector<24x16xf32>
    %cst_31 = arith.constant 1.000000e+00 : f32
    %122 = vector.broadcast %cst_31 : f32 to vector<24x16xf32>
    %123 = arith.addf %122, %121 : vector<24x16xf32>
    %124 = arith.divf %122, %123 : vector<24x16xf32>
    %125 = arith.mulf %116, %71 : vector<24x16xf32>
    %126 = arith.mulf %110, %118 : vector<24x16xf32>
    %127 = arith.addf %125, %126 : vector<24x16xf32>
    %128 = math.tanh %127 : vector<24x16xf32>
    %129 = arith.mulf %124, %128 : vector<24x16xf32>
    %130 = tpu.concatenate %48, %129 in 0 : vector<24x16xf32>, vector<24x16xf32> -> vector<48x16xf32>
    %131 = tpu.concatenate %104, %73 in 0 : vector<24x16xf32>, vector<24x16xf32> -> vector<48x16xf32>
    %132 = math.tanh %130 : vector<48x16xf32>
    %cst_32 = arith.constant dense<0xFF800000> : vector<48xf32>
    %133 = vector.multi_reduction <maximumf>, %132, %cst_32 [1] : vector<48x16xf32> to vector<48xf32>
    %134 = vector.shape_cast %133 : vector<48xf32> to vector<48x1xf32>
    %135 = math.tanh %131 : vector<48x16xf32>
    %cst_33 = arith.constant dense<0xFF800000> : vector<48xf32>
    %136 = vector.multi_reduction <maximumf>, %135, %cst_33 [1] : vector<48x16xf32> to vector<48xf32>
    %137 = vector.shape_cast %136 : vector<48xf32> to vector<48x1xf32>
    %138 = tpu.concatenate %134, %137 in 1 : vector<48x1xf32>, vector<48x1xf32> -> vector<48x2xf32>
    %c0_34 = arith.constant 0 : index
    %c0_35 = arith.constant 0 : index
    %139 = vector.load %arg8[%c0_34, %c0_35] : memref<4x48xf32, #tpu.memory_space<vmem>>, vector<4x48xf32>
    %cst_36 = arith.constant dense<0.000000e+00> : vector<4x2xf32>
    %140 = tpu.matmul %139, %138, %cst_36 {dimension_numbers = #tpu.dot_dimension_numbers<[1], [0], [0], [1], [0, 0, 1, 1], [], []>} : vector<4x48xf32>, vector<48x2xf32>, vector<4x2xf32> -> vector<4x2xf32>
    %c0_37 = arith.constant 0 : index
    %c0_38 = arith.constant 0 : index
    %141 = vector.load %arg9[%c0_37, %c0_38] : memref<4x1xf32, #tpu.memory_space<vmem>>, vector<4x1xf32>
    %142 = vector.broadcast %141 : vector<4x1xf32> to vector<4x2xf32>
    %143 = arith.addf %140, %142 : vector<4x2xf32>
    %c0_39 = arith.constant 0 : index
    %c0_40 = arith.constant 0 : index
    %144 = vector.load %arg10[%c0_39, %c0_40] : memref<4x2xf32, #tpu.memory_space<vmem>>, vector<4x2xf32>
    tpu.vector_store %arg10[%c0_39, %c0_40], %143 {strides = array<i32>} : memref<4x2xf32, #tpu.memory_space<vmem>>, vector<4x2xf32>,
    return
  }
  func.func @transform_0(%arg0: i32) -> (i32, i32) {
    %c0_i32 = arith.constant 0 : i32
    %c0_i32_0 = arith.constant 0 : i32
    %c0_i32_1 = arith.constant 0 : i32
    return %c0_i32, %c0_i32_0 : i32, i32
  }
  func.func @transform_1(%arg0: i32) -> (i32, i32) {
    %c0_i32 = arith.constant 0 : i32
    %c0_i32_0 = arith.constant 0 : i32
    %c0_i32_1 = arith.constant 0 : i32
    return %c0_i32, %c0_i32_0 : i32, i32
  }
  func.func @transform_2(%arg0: i32) -> (i32, i32) {
    %c0_i32 = arith.constant 0 : i32
    %c0_i32_0 = arith.constant 0 : i32
    %c0_i32_1 = arith.constant 0 : i32
    return %c0_i32, %c0_i32_0 : i32, i32
  }
  func.func @transform_3(%arg0: i32) -> (i32, i32) {
    %c0_i32 = arith.constant 0 : i32
    %c0_i32_0 = arith.constant 0 : i32
    %c0_i32_1 = arith.constant 0 : i32
    return %c0_i32, %c0_i32_0 : i32, i32
  }
  func.func @transform_4(%arg0: i32) -> (i32, i32) {
    %c0_i32 = arith.constant 0 : i32
    %c0_i32_0 = arith.constant 0 : i32
    %c0_i32_1 = arith.constant 0 : i32
    return %c0_i32, %c0_i32_0 : i32, i32
  }
  func.func @transform_5(%arg0: i32) -> (i32, i32) {
    %c0_i32 = arith.constant 0 : i32
    %c0_i32_0 = arith.constant 0 : i32
    %c0_i32_1 = arith.constant 0 : i32
    return %c0_i32, %c0_i32_0 : i32, i32
  }
  func.func @transform_6(%arg0: i32) -> (i32, i32) {
    %c0_i32 = arith.constant 0 : i32
    %c0_i32_0 = arith.constant 0 : i32
    %c0_i32_1 = arith.constant 0 : i32
    return %c0_i32, %c0_i32_0 : i32, i32
  }
  func.func @transform_7(%arg0: i32) -> (i32, i32) {
    %c0_i32 = arith.constant 0 : i32
    %c0_i32_0 = arith.constant 0 : i32
    %c0_i32_1 = arith.constant 0 : i32
    return %c0_i32, %c0_i32_0 : i32, i32
  }
  func.func @transform_8(%arg0: i32) -> (i32, i32) {
    %c0_i32 = arith.constant 0 : i32
    %c0_i32_0 = arith.constant 0 : i32
    %c0_i32_1 = arith.constant 0 : i32
    return %c0_i32, %c0_i32_0 : i32, i32
  }
  func.func @transform_9(%arg0: i32) -> (i32, i32) {
    %c0_i32 = arith.constant 0 : i32
    %c0_i32_0 = arith.constant 0 : i32
    %c0_i32_1 = arith.constant 0 : i32
    return %c0_i32, %c0_i32_0 : i32, i32
  }
}

</mosaic_0001>

<bundles_post_ra>
// kernel: clstm1_forward.1
= control target key start
LH: loop header
LB: loop body
LE: loop exit
PB: predicated region body
PF: predicated region fallthrough
CT: control target
= control target key end

     0   :  { %v3250_v0 = vmov 0.0|0.0   ;;  %v2431_v4 = vmov 0   ;;  %vm76_vm0 = vcmask 261120   ;;  %vm337_vm1 = vcmask 195584   ;;  %s3239_s0 = inlined_call_operand.vmem [shape: f32[160,32], index: 0, kind: input, shape index: {}]   ;;  %s3240_s1 = inlined_call_operand.vmem [shape: f32[24,160], index: 1, kind: input, shape index: {}]   ;;  %s3241_s2 = inlined_call_operand.vmem [shape: f32[24,1], index: 2, kind: input, shape index: {}]   ;;  %s3242_s4 = inlined_call_operand.vmem [shape: f32[192,1], index: 4, kind: input, shape index: {}]   ;;  %s3243_s3 = inlined_call_operand.vmem [shape: f32[192,24], index: 3, kind: input, shape index: {}]   ;;  %s3244_s5 = inlined_call_operand.vmem [shape: f32[96,24], index: 5, kind: input, shape index: {}]   ;;  %s3245_s6 = inlined_call_operand.vmem [shape: f32[96,24], index: 6, kind: input, shape index: {}]   ;;  %s3246_s8 = inlined_call_operand.vmem [shape: f32[4,1], index: 8, kind: input, shape index: {}]   ;;  %s3247_s7 = inlined_call_operand.vmem [shape: f32[4,48], index: 7, kind: input, shape index: {}]   ;;  %s3248_s9 = inlined_call_operand.vmem [shape: f32[4,2], index: 9, kind: output, shape index: {}]  }
   0x1   :  { %2150 = vmatprep.subr.bf16.mxu0 %v3250_v0  ;;  %v38_v1 = vld [vmem:[%s3239_s0] sm:$0xff]  ;;  %v39_v2 = vld [vmem:[%s3239_s0 + $0x8] sm:$0xff]  ;;  %v40_v3 = vld [vmem:[%s3239_s0 + $0x10] sm:$0xff]  ;;  %2207 = vset.pattern.permute.xlu0 %v2431_v4  ;;  %vm1665_vm2 = vcmask 130048   ;;  %vm1690_vm3 = vcmask 261248   ;;  %vm1709_vm4 = vcmask 7168  }
   0x2   :  { %v2151_v5 = vpack.c.bf16 %v39_v2, %v38_v1  ;;  %v41_v6 = vld [vmem:[%s3239_s0 + $0x18] sm:$0xff]  ;;  %2208 = vset.pattern.permute.xlu1 %v2431_v4  ;;  %v42_v8 = vld [vmem:[%s3239_s0 + $0x20] sm:$0xff]  ;;  %v43_v9 = vld [vmem:[%s3239_s0 + $0x28] sm:$0xff]  ;;  %v3249_v1 = vmov 0.0   ;;  %vm2435_vm5 = vmmov 0   ;;  %vm1723_vm6 = vcmask 392192  }
   0x3   :  { %v2154_v7 = vpack.c.bf16 %v41_v6, %v40_v3  ;;  %v33_v10 = vld [vmem:[%s3240_s1 + $0x8] sm:$0xff]  ;;  %v2157_v11 = vpack.c.bf16 %v43_v9, %v42_v8  ;;  %v44_v12 = vld [vmem:[%s3239_s0 + $0x30] sm:$0xff]  ;;  %v45_v13 = vld [vmem:[%s3239_s0 + $0x38] sm:$0xff]  ;;  %vm1797_vm7 = vcmask 11264  }
   0x4   :  { %2152 = vmatpush1.bf16.msra.mxu0 %v2151_v5  ;;  %1803 = vmatprep.mubr.msk.f32.mxu0 %vm76_vm0, %v33_v10  ;;  %v58_v14 = vld [vmem:[%s3241_s2] sm:$0xff]  ;;  %v59_v15 = vld [vmem:[%s3241_s2 + $0x8] sm:$0xff]  ;;  %v60_v16 = vld [vmem:[%s3241_s2 + $0x10] sm:$0xff]  ;;  %v2160_v17 = vpack.c.bf16 %v45_v13, %v44_v12 }
   0x5   :  { %2153 = vmatprep.subr.bf16.mxu0 %v3250_v0  ;;  %63 = vperm.xlu0 %2207, %v58_v14   ;;  %v46_v18 = vld [vmem:[%s3239_s0 + $0x40] sm:$0xff]  ;;  %v47_v19 = vld [vmem:[%s3239_s0 + $0x48] sm:$0xff]  ;;  %v48_v23 = vld [vmem:[%s3239_s0 + $0x50] sm:$0xff] }
   0x6   :  { %73 = vperm.xlu1 %2208, %v60_v16   ;;  %v193_v20 = vld [vmem:[%s3242_s4] sm:$0xff]  ;;  %v194_v21 = vld [vmem:[%s3242_s4 + $0x8] sm:$0xff]  ;;  %v2163_v22 = vpack.c.bf16 %v47_v19, %v46_v18  ;;  %v49_v24 = vld [vmem:[%s3239_s0 + $0x58] sm:$0xff] }
   0x7   :  { %v196_v25 = vld [vmem:[%s3242_s4 + $0x18] sm:$0xff]  ;;  %v197_v26 = vld [vmem:[%s3242_s4 + $0x20] sm:$0xff]  ;;  %v2166_v27 = vpack.c.bf16 %v49_v24, %v48_v23  ;;  %v51_v29 = vld [vmem:[%s3239_s0 + $0x68] sm:$0xff] }
   0x8   :  { %2155 = vmatpush1.bf16.msra.mxu0 %v2154_v7  ;;  %v50_v28 = vld [vmem:[%s3239_s0 + $0x60] sm:$0xff]  ;;  %v195_v30 = vld [vmem:[%s3242_s4 + $0x10] sm:$0xff]  ;;  %v198_v31 = vld [vmem:[%s3242_s4 + $0x28] sm:$0xff] }
   0x9   :  { %2156 = vmatprep.subr.bf16.mxu0 %v3250_v0  ;;  %68 = vperm.xlu0 %2207, %v59_v15   ;;  %v2169_v32 = vpack.c.bf16 %v51_v29, %v50_v28  ;;  %v52_v33 = vld [vmem:[%s3239_s0 + $0x70] sm:$0xff]  ;;  %v53_v34 = vld [vmem:[%s3239_s0 + $0x78] sm:$0xff]  ;;  %v205_v35 = vld [vmem:[%s3242_s4 + $0x60] sm:$0xff] }
   0xa   :  { %219 = vperm.xlu1 %2208, %v193_v20   ;;  %v206_v36 = vld [vmem:[%s3242_s4 + $0x68] sm:$0xff]  ;;  %v2172_v37 = vpack.c.bf16 %v53_v34, %v52_v33  ;;  %v54_v38 = vld [vmem:[%s3239_s0 + $0x80] sm:$0xff]  ;;  %v208_v40 = vld [vmem:[%s3242_s4 + $0x78] sm:$0xff] }
   0xb   :  { %v55_v39 = vld [vmem:[%s3239_s0 + $0x88] sm:$0xff]  ;;  %v209_v41 = vld [vmem:[%s3242_s4 + $0x80] sm:$0xff]  ;;  %v56_v43 = vld [vmem:[%s3239_s0 + $0x90] sm:$0xff] }
   0xc   :  { %2158 = vmatpush1.bf16.msra.mxu0 %v2157_v11  ;;  %v2175_v42 = vpack.c.bf16 %v55_v39, %v54_v38  ;;  %v57_v44 = vld [vmem:[%s3239_s0 + $0x98] sm:$0xff]  ;;  %v207_v45 = vld [vmem:[%s3242_s4 + $0x70] sm:$0xff]  ;;  %v210_v46 = vld [vmem:[%s3242_s4 + $0x88] sm:$0xff] }
   0xd   :  { %2159 = vmatprep.subr.bf16.mxu0 %v3250_v0  ;;  %224 = vperm.xlu0 %2207, %v194_v21   ;;  %v2178_v47 = vpack.c.bf16 %v57_v44, %v56_v43  ;;  %v199_v48 = vld [vmem:[%s3242_s4 + $0x30] sm:$0xff]  ;;  %v200_v49 = vld [vmem:[%s3242_s4 + $0x38] sm:$0xff]  ;;  %v32_v50 = vld [vmem:[%s3240_s1] sm:$0xff] }
   0xe   :  { %234 = vperm.xlu1 %2208, %v196_v25   ;;  %v35_v51 = vld [vmem:[%s3240_s1 + $0x18] sm:$0xff]  ;;  %v202_v52 = vld [vmem:[%s3242_s4 + $0x48] sm:$0xff]  ;;  %v203_v53 = vld [vmem:[%s3242_s4 + $0x50] sm:$0xff] }
   0xf   :  { %v34_v54 = vld [vmem:[%s3240_s1 + $0x10] sm:$0xff]  ;;  %v37_v55 = vld [vmem:[%s3240_s1 + $0x28] sm:$0xff]  ;;  %v201_v56 = vld [vmem:[%s3242_s4 + $0x40] sm:$0xff] }
  0x10   :  { %2161 = vmatpush1.bf16.msra.mxu0 %v2160_v17  ;;  %v204_v57 = vld [vmem:[%s3242_s4 + $0x58] sm:$0xff]  ;;  %v36_v58 = vld [vmem:[%s3240_s1 + $0x20] sm:$0xff]  ;;  %v211_v59 = vld [vmem:[%s3242_s4 + $0x90] sm:$0xff] }
  0x11   :  { %2162 = vmatprep.subr.bf16.mxu0 %v3250_v0  ;;  %239 = vperm.xlu0 %2207, %v197_v26   ;;  %v212_v60 = vld [vmem:[%s3242_s4 + $0x98] sm:$0xff]  ;;  %v214_v61 = vld [vmem:[%s3242_s4 + $0xa8] sm:$0xff]  ;;  %v215_v62 = vld [vmem:[%s3242_s4 + $0xb0] sm:$0xff] }
  0x12   :  { %229 = vperm.xlu1 %2208, %v195_v30   ;;  %v169_v63 = vld [vmem:[%s3243_s3] sm:$0xff]  ;;  %v2663_v3 = vld [vmem:[%s3244_s5 + $0x8] sm:$0xff]  ;;  %v2672_v4 = vld [vmem:[%s3244_s5 + $0x10] sm:$0xff] }
  0x13   :  { %2011 = vmatprep.mubr.msk.f32.mxu1 %vm337_vm1, %v169_v63  ;;  %v595_v2 = vld [vmem:[%s3244_s5] sm:$0xff]  ;;  %v2677_v5 = vld [vmem:[%s3244_s5 + $0x18] sm:$0xff]  ;;  %v2691_v7 = vld [vmem:[%s3244_s5 + $0x28] sm:$0xff] }
  0x14   :  { %2164 = vmatpush1.bf16.msra.mxu0 %v2163_v22  ;;  %v2686_v6 = vld [vmem:[%s3244_s5 + $0x20] sm:$0xff]  ;;  %v2700_v8 = vld [vmem:[%s3244_s5 + $0x30] sm:$0xff]  ;;  %v2705_v9 = vld [vmem:[%s3244_s5 + $0x38] sm:$0xff] }
  0x15   :  { %2165 = vmatprep.subr.bf16.mxu0 %v3250_v0  ;;  %244 = vperm.xlu0 %2207, %v198_v31   ;;  %v2714_v10 = vld [vmem:[%s3244_s5 + $0x40] sm:$0xff]  ;;  %v2719_v11 = vld [vmem:[%s3244_s5 + $0x48] sm:$0xff]  ;;  %v2728_v12 = vld [vmem:[%s3244_s5 + $0x50] sm:$0xff] }
  0x16   :  { %279 = vperm.xlu1 %2208, %v205_v35   ;;  %v2733_v13 = vld [vmem:[%s3244_s5 + $0x58] sm:$0xff]  ;;  %v170_v30 = vld [vmem:[%s3243_s3 + $0x8] sm:$0xff]  ;;  %v171_v31 = vld [vmem:[%s3243_s3 + $0x10] sm:$0xff] }
  0x17   :  { %v173_v33 = vld [vmem:[%s3243_s3 + $0x20] sm:$0xff]  ;;  %v174_v34 = vld [vmem:[%s3243_s3 + $0x28] sm:$0xff]  ;;  %v175_v35 = vld [vmem:[%s3243_s3 + $0x30] sm:$0xff] }
  0x18   :  { %2167 = vmatpush1.bf16.msra.mxu0 %v2166_v27  ;;  %v178_v38 = vld [vmem:[%s3243_s3 + $0x48] sm:$0xff]  ;;  %v179_v39 = vld [vmem:[%s3243_s3 + $0x50] sm:$0xff]  ;;  %v184_v44 = vld [vmem:[%s3243_s3 + $0x78] sm:$0xff] }
  0x19   :  { %2168 = vmatprep.subr.bf16.mxu0 %v3250_v0  ;;  %284 = vperm.xlu0 %2207, %v206_v36   ;;  %v176_v36 = vld [vmem:[%s3243_s3 + $0x38] sm:$0xff]  ;;  %v183_v43 = vld [vmem:[%s3243_s3 + $0x70] sm:$0xff] }
  0x1a   :  { %294 = vperm.xlu1 %2208, %v208_v40   ;;  %v180_v40 = vld [vmem:[%s3243_s3 + $0x58] sm:$0xff]  ;;  %v2902_v63 = vld [vmem:[%s3245_s6 + $0x50] sm:$0xff] }
  0x1c   :  { %2170 = vmatpush1.bf16.msra.mxu0 %v2169_v32  ;;  %v172_v32 = vld [vmem:[%s3243_s3 + $0x18] sm:$0xff] }
  0x1d   :  { %2171 = vmatprep.subr.bf16.mxu0 %v3250_v0  ;;  %299 = vperm.xlu0 %2207, %v209_v41   ;;  %v181_v41 = vld [vmem:[%s3243_s3 + $0x60] sm:$0xff] }
  0x1e   :  { %289 = vperm.xlu1 %2208, %v207_v45   ;;  %v185_v45 = vld [vmem:[%s3243_s3 + $0x80] sm:$0xff] }
  0x20   :  { %2173 = vmatpush1.bf16.msra.mxu0 %v2172_v37  ;;  %v177_v37 = vld [vmem:[%s3243_s3 + $0x40] sm:$0xff] }
  0x21   :  { %2174 = vmatprep.subr.bf16.mxu0 %v3250_v0  ;;  %304 = vperm.xlu0 %2207, %v210_v46   ;;  %v186_v46 = vld [vmem:[%s3243_s3 + $0x88] sm:$0xff] }
  0x22   :  { %249 = vperm.xlu1 %2208, %v199_v48   ;;  %v188_v48 = vld [vmem:[%s3243_s3 + $0x98] sm:$0xff] }
  0x24   :  { %2176 = vmatpush1.bf16.msra.mxu0 %v2175_v42  ;;  %v182_v42 = vld [vmem:[%s3243_s3 + $0x68] sm:$0xff] }
  0x25   :  { %2177 = vmatprep.subr.bf16.mxu0 %v3250_v0  ;;  %254 = vperm.xlu0 %2207, %v200_v49   ;;  %v189_v49 = vld [vmem:[%s3243_s3 + $0xa0] sm:$0xff] }
  0x26   :  { %264 = vperm.xlu1 %2208, %v202_v52   ;;  %v192_v52 = vld [vmem:[%s3243_s3 + $0xb8] sm:$0xff] }
  0x28   :  { %2179 = vmatpush1.bf16.msra.mxu0 %v2178_v47  ;;  %v187_v47 = vld [vmem:[%s3243_s3 + $0x90] sm:$0xff] }
  0x29   :  { %269 = vperm.xlu0 %2207, %v203_v53   ;;  %2047 = vmatprep.subr.mxu0 %v3249_v1  ;;  %v607_v53 = vld [vmem:[%s3245_s6] sm:$0xff] }
  0x2a   :  { %259 = vperm.xlu1 %2208, %v201_v56   ;;  %v2855_v56 = vld [vmem:[%s3245_s6 + $0x18] sm:$0xff] }
  0x2b   :  { %151 = vmatmul.mubr.f32.vlgmr.msra.gmra.mrb[0].mxu0 %v32_v50  ;;  %v190_v50 = vld [vmem:[%s3243_s3 + $0xa8] sm:$0xff] }
  0x2c   :  { %1804 = vmatprep.mubr.msk.f32.mxu0 %vm76_vm0, %v35_v51  ;;  %2048 = vmatpush3.msra.mxu0 %v3249_v1  ;;  %v191_v51 = vld [vmem:[%s3243_s3 + $0xb0] sm:$0xff] }
  0x2d   :  { %274 = vperm.xlu0 %2207, %v204_v57   ;;  %v2860_v57 = vld [vmem:[%s3245_s6 + $0x20] sm:$0xff] }
  0x2e   :  { %309 = vperm.xlu1 %2208, %v211_v59   ;;  %v2874_v59 = vld [vmem:[%s3245_s6 + $0x30] sm:$0xff] }
  0x2f   :  { %156 = vmatmul.mubr.f32.gmra.mrb[2].mxu0 %v34_v54  ;;  %v2841_v54 = vld [vmem:[%s3245_s6 + $0x8] sm:$0xff] }
  0x30   :  { %1805 = vmatprep.mubr.msk.f32.mxu0 %vm76_vm0, %v37_v55  ;;  %v2846_v55 = vld [vmem:[%s3245_s6 + $0x10] sm:$0xff] }
  0x31   :  { %314 = vperm.xlu0 %2207, %v212_v60   ;;  %v2883_v60 = vld [vmem:[%s3245_s6 + $0x38] sm:$0xff] }
  0x32   :  { %324 = vperm.xlu1 %2208, %v214_v61   ;;  %v2888_v61 = vld [vmem:[%s3245_s6 + $0x40] sm:$0xff] }
  0x33   :  { %161 = vmatmul.mubr.f32.gmra.mrb[4].mxu0 %v36_v58  ;;  %v2869_v58 = vld [vmem:[%s3245_s6 + $0x28] sm:$0xff] }
  0x34   :  { %2049 = vmatprep.mubr.msk.f32.mxu0 %vm337_vm1, %v595_v2 }
  0x35   :  { %329 = vperm.xlu0 %2207, %v215_v62   ;;  %v2897_v62 = vld [vmem:[%s3245_s6 + $0x48] sm:$0xff] }
  0x37   :  { %2050 = vmatmul.mubr.msk.f32.vlgmr.msra.gmra.mrb[6].mxu0 %vm337_vm1, %v2663_v3 }
  0x38   :  { %2052 = vmatprep.mubr.msk.f32.mxu0 %vm337_vm1, %v2672_v4 }
  0x3b   :  { %2053 = vmatmul.mubr.msk.f32.gmra.mrb[8].mxu0 %vm337_vm1, %v2677_v5 }
  0x3c   :  { %2055 = vmatprep.mubr.msk.f32.mxu0 %vm337_vm1, %v2686_v6 }
  0x3f   :  { %2056 = vmatmul.mubr.msk.f32.gmra.mrb[10].mxu0 %vm337_vm1, %v2691_v7 }
  0x40   :  { %2058 = vmatprep.mubr.msk.f32.mxu0 %vm337_vm1, %v2700_v8 }
  0x43   :  { %2059 = vmatmul.mubr.msk.f32.gmra.mrb[12].mxu0 %vm337_vm1, %v2705_v9 }
  0x44   :  { %2061 = vmatprep.mubr.msk.f32.mxu0 %vm337_vm1, %v2714_v10 }
  0x47   :  { %2062 = vmatmul.mubr.msk.f32.gmra.mrb[14].mxu0 %vm337_vm1, %v2719_v11 }
  0x48   :  { %2064 = vmatprep.mubr.msk.f32.mxu0 %vm337_vm1, %v2728_v12 }
  0x4b   :  { %2065 = vmatmul.mubr.msk.f32.gmra.mrb[16].mxu0 %vm337_vm1, %v2733_v13 }
  0x4c   :  { %2093 = vmatprep.mubr.msk.f32.mxu0 %vm337_vm1, %v595_v2  ;;  %v2911_v2 = vld [vmem:[%s3245_s6 + $0x58] sm:$0xff]  ;;  %s2433_s6 = smov 16  }
  0x84   :  { %v64_v14 = vpop.permute.xlu0 %63 }
  0x85   :  { %v74_v24 = vpop.permute.xlu1 %73 }
  0x88   :  { %v69_v18 = vpop.permute.xlu0 %68 }
  0xfe   :  { %v152_v15 = vpop.f32.mrb[0].mxu0 }
  0xff   :  { %v154_v16 = vpop.f32.mrb[1].mxu0  ;;  %v153_v17 = vadd.f32 %v152_v15, %v64_v14 }
 0x101   :  { %v166_v22 = vmax.f32 %v153_v17, 0.0 }
 0x102   :  { %v157_v19 = vpop.f32.mrb[2].mxu0 }
 0x103   :  { %v158_v20 = vadd.f32 %v157_v19, %v69_v18  ;;  %v159_v21 = vpop.f32.mrb[3].mxu0 }
 0x105   :  { %v167_v23 = vmax.f32 %v158_v20, 0.0 }
 0x106   :  { %v162_v25 = vpop.f32.mrb[4].mxu0 }
 0x107   :  { %v163_v26 = vadd.f32 %v162_v25, %v74_v24  ;;  %v164_v27 = vpop.f32.mrb[5].mxu0  ;;  %v2180_v28 = vpack.c.bf16 %v167_v23, %v166_v22 }
 0x108   :  { %v225_v27 = vpop.permute.xlu0 %224 }
 0x109   :  { %v168_v29 = vmax.f32 %v163_v26, 0.0  ;;  %2181 = vmatprep.subr.bf16.mxu1 %v2180_v28  ;;  %v220_v26 = vpop.permute.xlu1 %219 }
 0x10a   :  { %2183 = vmatpush3.bf16.msra.mxu1 %v2180_v28  ;;  %v2051_v14 = vpop.f32.mrb[6].mxu0 }
 0x10b   :  { %2009 = vmatprep.subr.mxu1 %v168_v29  ;;  %v721_v15 = vpop.f32.mrb[7].mxu0 }
 0x10d   :  { %v235_v28 = vpop.permute.xlu1 %234 }
 0x10e   :  { %2010 = vmatpush3.msra.mxu1 %v168_v29  ;;  %v2054_v16 = vpop.f32.mrb[8].mxu0  ;;  %v240_v29 = vpop.permute.xlu0 %239 }
 0x10f   :  { %2012 = vmatmul.mubr.msk.f32.vlgmr.msra.gmra.mrb[0].mxu1 %vm337_vm1, %v170_v30  ;;  %2067 = vmatprep.subr.mxu1 %v3249_v1  ;;  %v731_v17 = vpop.f32.mrb[9].mxu0 }
 0x110   :  { %2014 = vmatprep.mubr.msk.f32.mxu1 %vm337_vm1, %v171_v31  ;;  %2068 = vmatpush3.msra.mxu1 %v3249_v1 }
 0x111   :  { %v230_v30 = vpop.permute.xlu1 %229 }
 0x112   :  { %v2057_v18 = vpop.f32.mrb[10].mxu0  ;;  %v245_v31 = vpop.permute.xlu0 %244 }
 0x113   :  { %2015 = vmatmul.mubr.msk.f32.gmra.mrb[2].mxu1 %vm337_vm1, %v172_v32  ;;  %v741_v19 = vpop.f32.mrb[11].mxu0 }
 0x114   :  { %2017 = vmatprep.mubr.msk.f32.mxu1 %vm337_vm1, %v173_v33 }
 0x115   :  { %v2924_v32 = vpop.permute.xlu1 %279 }
 0x116   :  { %v2060_v20 = vpop.f32.mrb[12].mxu0  ;;  %v2926_v33 = vpop.permute.xlu0 %284 }
 0x117   :  { %2018 = vmatmul.mubr.msk.f32.gmra.mrb[4].mxu1 %vm337_vm1, %v174_v34  ;;  %v751_v21 = vpop.f32.mrb[13].mxu0 }
 0x118   :  { %2020 = vmatprep.mubr.msk.f32.mxu1 %vm337_vm1, %v175_v35 }
 0x119   :  { %v2928_v34 = vpop.permute.xlu1 %294 }
 0x11a   :  { %v2916_v22 = vpop.f32.mrb[14].mxu0  ;;  %v2930_v35 = vpop.permute.xlu0 %299 }
 0x11b   :  { %2021 = vmatmul.mubr.msk.f32.gmra.mrb[6].mxu1 %vm337_vm1, %v176_v36  ;;  %v2918_v23 = vpop.f32.mrb[15].mxu0 }
 0x11c   :  { %2023 = vmatprep.mubr.msk.f32.mxu1 %vm337_vm1, %v177_v37 }
 0x11d   :  { %v2932_v36 = vpop.permute.xlu1 %289 }
 0x11e   :  { %v2920_v24 = vpop.f32.mrb[16].mxu0 }
 0x11f   :  { %2024 = vmatmul.mubr.msk.f32.gmra.mrb[8].mxu1 %vm337_vm1, %v178_v38  ;;  %v2922_v25 = vpop.f32.mrb[17].mxu0 }
 0x120   :  { %2026 = vmatprep.mubr.msk.f32.mxu1 %vm337_vm1, %v179_v39 }
 0x123   :  { %2027 = vmatmul.mubr.msk.f32.gmra.mrb[10].mxu1 %vm337_vm1, %v180_v40  ;;  %v2936_v40 = vpop.permute.xlu0 %304 }
 0x124   :  { %2029 = vmatprep.mubr.msk.f32.mxu1 %vm337_vm1, %v181_v41 }
 0x127   :  { %2030 = vmatmul.mubr.msk.f32.gmra.mrb[12].mxu1 %vm337_vm1, %v182_v42 }
 0x128   :  { %2032 = vmatprep.mubr.msk.f32.mxu1 %vm337_vm1, %v183_v43 }
 0x12b   :  { %2033 = vmatmul.mubr.msk.f32.gmra.mrb[14].mxu1 %vm337_vm1, %v184_v44 }
 0x12c   :  { %2035 = vmatprep.mubr.msk.f32.mxu1 %vm337_vm1, %v185_v45  ;;  %v250_v45 = vpop.permute.xlu1 %249 }
 0x12f   :  { %2036 = vmatmul.mubr.msk.f32.gmra.mrb[16].mxu1 %vm337_vm1, %v186_v46 }
 0x130   :  { %2038 = vmatprep.mubr.msk.f32.mxu1 %vm337_vm1, %v187_v47 }
 0x133   :  { %2039 = vmatmul.mubr.msk.f32.gmra.mrb[18].mxu1 %vm337_vm1, %v188_v48 }
 0x134   :  { %2041 = vmatprep.mubr.msk.f32.mxu1 %vm337_vm1, %v189_v49 }
 0x137   :  { %2042 = vmatmul.mubr.msk.f32.gmra.mrb[20].mxu1 %vm337_vm1, %v190_v50 }
 0x138   :  { %2044 = vmatprep.mubr.msk.f32.mxu1 %vm337_vm1, %v191_v51 }
 0x13b   :  { %2045 = vmatmul.mubr.msk.f32.gmra.mrb[22].mxu1 %vm337_vm1, %v192_v52  ;;  %v255_v52 = vpop.permute.xlu0 %254 }
 0x13c   :  { %2069 = vmatprep.mubr.msk.f32.mxu1 %vm337_vm1, %v607_v53 }
 0x13f   :  { %2070 = vmatmul.mubr.msk.f32.vlgmr.msra.gmra.mrb[24].mxu1 %vm337_vm1, %v2841_v54 }
 0x140   :  { %2072 = vmatprep.mubr.msk.f32.mxu1 %vm337_vm1, %v2846_v55 }
 0x143   :  { %2073 = vmatmul.mubr.msk.f32.gmra.mrb[26].mxu1 %vm337_vm1, %v2855_v56 }
 0x144   :  { %2075 = vmatprep.mubr.msk.f32.mxu1 %vm337_vm1, %v2860_v57 }
 0x147   :  { %2076 = vmatmul.mubr.msk.f32.gmra.mrb[28].mxu1 %vm337_vm1, %v2869_v58 }
 0x148   :  { %2078 = vmatprep.mubr.msk.f32.mxu1 %vm337_vm1, %v2874_v59 }
 0x14b   :  { %2079 = vmatmul.mubr.msk.f32.gmra.mrb[30].mxu1 %vm337_vm1, %v2883_v60 }
 0x14c   :  { %2081 = vmatprep.mubr.msk.f32.mxu1 %vm337_vm1, %v2888_v61 }
 0x14f   :  { %2082 = vmatmul.mubr.msk.f32.gmra.mrb[32].mxu1 %vm337_vm1, %v2897_v62 }
 0x150   :  { %2084 = vmatprep.mubr.msk.f32.mxu1 %vm337_vm1, %v2902_v63 }
 0x153   :  { %2085 = vmatmul.mubr.msk.f32.gmra.mrb[34].mxu1 %vm337_vm1, %v2911_v2 }
 0x154   :  { %2117 = vmatprep.mubr.msk.f32.mxu1 %vm337_vm1, %v607_v53 }
 0x1e2   :  { %v2013_v37 = vpop.f32.mrb[0].mxu1 }
 0x1e3   :  { %v2934_v38 = vadd.f32 %v2013_v37, %v225_v27  ;;  %v476_v39 = vpop.f32.mrb[1].mxu1 }
 0x1e4   :  { %v2938_v41 = vadd.f32 %v476_v39, %v220_v26 }
 0x1e5   :  { %v781_v42 = vadd.f32 %v2051_v14, %v2934_v38 }
 0x1e6   :  { %v780_v43 = vadd.f32 %v721_v15, %v2938_v41  ;;  %v2016_v44 = vpop.f32.mrb[2].mxu1 }
 0x1e7   :  { %v1855_v46 = vmul.f32 -1.442695, %v781_v42  ;;  %v2942_v47 = vadd.f32 %v2016_v44, %v235_v28  ;;  %v486_v48 = vpop.f32.mrb[3].mxu1  ;;  %v265_v28 = vpop.permute.xlu1 %264 }
 0x1e8   :  { %v1854_v49 = vmul.f32 -1.442695, %v780_v43  ;;  %v2944_v50 = vadd.f32 %v486_v48, %v230_v30 }
 0x1e9   :  { %2214 = vpow2.f32 %v1855_v46  ;;  %v783_v51 = vadd.f32 %v2054_v16, %v2942_v47  ;;  %v270_v46 = vpop.permute.xlu0 %269 }
 0x1ea   :  { %2216 = vpow2.f32 %v1854_v49  ;;  %v782_v53 = vadd.f32 %v731_v17, %v2944_v50  ;;  %v2019_v26 = vpop.f32.mrb[4].mxu1 }
 0x1eb   :  { %v1857_v14 = vmul.f32 -1.442695, %v783_v51  ;;  %v2948_v27 = vadd.f32 %v2019_v26, %v245_v31  ;;  %v496_v15 = vpop.f32.mrb[5].mxu1 }
 0x1ec   :  { %v1856_v37 = vmul.f32 -1.442695, %v782_v53  ;;  %v2950_v39 = vadd.f32 %v496_v15, %v240_v29  ;;  %v260_v53 = vpop.permute.xlu1 %259 }
 0x1ed   :  { %2218 = vpow2.f32 %v1857_v14  ;;  %v785_v30 = vadd.f32 %v2057_v18, %v2948_v27 }
 0x1ee   :  { %2220 = vpow2.f32 %v1856_v37  ;;  %v784_v42 = vadd.f32 %v741_v19, %v2950_v39  ;;  %v2022_v16 = vpop.f32.mrb[6].mxu1 }
 0x1ef   :  { %v1859_v43 = vmul.f32 -1.442695, %v785_v30  ;;  %v2954_v44 = vadd.f32 %v2022_v16, %v255_v52  ;;  %v506_v17 = vpop.f32.mrb[7].mxu1 }
 0x1f0   :  { %v1858_v48 = vmul.f32 -1.442695, %v784_v42  ;;  %v2956_v31 = vadd.f32 %v506_v17, %v250_v45 }
 0x1f1   :  { %3257 = vst [vmem:[#allocation2_spill] sm:$0xff] %v2954_v44  ;;  %2222 = vpow2.f32 %v1859_v43  ;;  %v787_v29 = vadd.f32 %v2060_v20, %v2954_v44  ;;  %v275_v20 = vpop.permute.xlu0 %274 }
 0x1f2   :  { %2224 = vpow2.f32 %v1858_v48  ;;  %v786_v49 = vadd.f32 %v751_v21, %v2956_v31  ;;  %v2025_v51 = vpop.f32.mrb[8].mxu1 }
 0x1f3   :  { %v2215_v18 = vpop.eup %2214  ;;  %v2960_v26 = vadd.f32 %v2025_v51, %v265_v28  ;;  %v516_v19 = vpop.f32.mrb[9].mxu1  ;;  %2226 = vtanh.f32 %v787_v29 }
 0x1f4   :  { %v2217_v14 = vpop.eup %2216  ;;  %v1023_v52 = vadd.f32 1.0, %v2215_v18  ;;  %v2962_v15 = vadd.f32 %v516_v19, %v260_v53  ;;  %2228 = vtanh.f32 %v786_v49 }
 0x1f5   :  { %3258 = vst [vmem:[#allocation3_spill] sm:$0xff] %v2960_v26  ;;  %v1022_v37 = vadd.f32 1.0, %v2217_v14  ;;  %v789_v45 = vadd.f32 %v2916_v22, %v2960_v26 }
 0x1f6   :  { %3259 = vst [vmem:[#allocation4_spill] sm:$0xff] %v2962_v15  ;;  %2230 = vrcp.f32 %v1023_v52  ;;  %v788_v21 = vadd.f32 %v2918_v23, %v2962_v15  ;;  %v2028_v30 = vpop.f32.mrb[10].mxu1 }
 0x1f7   :  { %v2219_v42 = vpop.eup %2218  ;;  %2232 = vrcp.f32 %v1022_v37  ;;  %v1860_v28 = vmul.f32 -1.442695, %v789_v45  ;;  %v2968_v16 = vadd.f32 %v2028_v30, %v275_v20  ;;  %v526_v43 = vpop.f32.mrb[11].mxu1 }
 0x1f8   :  { %v2221_v17 = vpop.eup %2220  ;;  %v1040_v48 = vadd.f32 1.0, %v2219_v42  ;;  %2234 = vtanh.f32 %v788_v21  ;;  %v2970_v29 = vadd.f32 %v526_v43, %v270_v46 }
 0x1f9   :  { %3260 = vst [vmem:[#allocation5_spill] sm:$0xff] %v2968_v16  ;;  %v1024_v49 = vadd.f32 1.0, %v2221_v17  ;;  %2236 = vpow2.f32 %v1860_v28  ;;  %v791_v22 = vadd.f32 %v2920_v24, %v2968_v16 }
 0x1fa   :  { %3261 = vst [vmem:[#allocation6_spill] sm:$0xff] %v2970_v29  ;;  %2238 = vrcp.f32 %v1040_v48  ;;  %v790_v23 = vadd.f32 %v2922_v25, %v2970_v29  ;;  %v2976_v51 = vpop.f32.mrb[12].mxu1 }
 0x1fb   :  { %v2223_v18 = vpop.eup %2222  ;;  %2240 = vrcp.f32 %v1024_v49  ;;  %v2978_v53 = vpop.f32.mrb[13].mxu1  ;;  %v1862_v37 = vmul.f32 -1.442695, %v791_v22 }
 0x1fc   :  { %v2225_v19 = vpop.eup %2224  ;;  %v1042_v14 = vadd.f32 1.0, %v2223_v18  ;;  %v1861_v52 = vmul.f32 -1.442695, %v790_v23 }
 0x1fd   :  { %v1041_v46 = vadd.f32 1.0, %v2225_v19  ;;  %v2227_v45 = vpop.eup %2226 }
 0x1fe   :  { %2242 = vrcp.f32 %v1042_v14  ;;  %v2980_v20 = vpop.f32.mrb[14].mxu1  ;;  %v2229_v24 = vpop.eup %2228 }
 0x1ff   :  { %2244 = vrcp.f32 %v1041_v46  ;;  %v2982_v21 = vpop.f32.mrb[15].mxu1 }
 0x200   :  { %v2231_v25 = vpop.eup %2230  ;;  %2246 = vpow2.f32 %v1861_v52 }
 0x201   :  { %v2233_v30 = vpop.eup %2232  ;;  %v1074_v42 = vmul.f32 %v2231_v25, %v2227_v45  ;;  %2248 = vpow2.f32 %v1862_v37 }
 0x202   :  { %v2235_v28 = vpop.eup %2234  ;;  %v1073_v43 = vmul.f32 %v2233_v30, %v2229_v24  ;;  %v2984_v17 = vpop.f32.mrb[16].mxu1 }
 0x203   :  { %v2237_v48 = vpop.eup %2236  ;;  %v2986_v49 = vpop.f32.mrb[17].mxu1 }
 0x204   :  { %v2239_v22 = vpop.eup %2238  ;;  %v1061_v1 = vadd.f32 1.0, %v2237_v48 }
 0x205   :  { %v2241_v23 = vpop.eup %2240  ;;  %v1070_v18 = vmul.f32 0.0, %v2239_v22 }
 0x206   :  { %v1075_v19 = vmul.f32 %v2241_v23, %v2235_v28  ;;  %v2988_v14 = vpop.f32.mrb[18].mxu1  ;;  %2250 = vrcp.f32 %v1061_v1 }
 0x207   :  { %v2990_v46 = vadd.f32 %v1073_v43, %v1070_v18  ;;  %v2992_v52 = vpop.f32.mrb[19].mxu1 }
 0x208   :  { %v2243_v45 = vpop.eup %2242 }
 0x209   :  { %v2245_v37 = vpop.eup %2244  ;;  %v1072_v25 = vmul.f32 0.0, %v2243_v45  ;;  %2252 = vtanh.f32 %v2990_v46 }
 0x20a   :  { %v2247_v24 = vpop.eup %2246  ;;  %v1071_v30 = vmul.f32 0.0, %v2245_v37  ;;  %v2994_v0 = vpop.f32.mrb[20].mxu1 }
 0x20b   :  { %v2249_v15 = vpop.eup %2248  ;;  %v2996_v16 = vadd.f32 %v1075_v19, %v1072_v25  ;;  %v1062_v22 = vadd.f32 1.0, %v2247_v24  ;;  %v2998_v28 = vpop.f32.mrb[21].mxu1 }
 0x20c   :  { %v3000_v23 = vadd.f32 %v1074_v42, %v1071_v30  ;;  %v1063_v43 = vadd.f32 1.0, %v2249_v15 }
 0x20d   :  { %2254 = vrcp.f32 %v1062_v22 }
 0x20e   :  { %2256 = vtanh.f32 %v3000_v23  ;;  %v3004_v48 = vpop.f32.mrb[22].mxu1 }
 0x20f   :  { %v3006_v18 = vpop.f32.mrb[23].mxu1  ;;  %2258 = vtanh.f32 %v2996_v16 }
 0x210   :  { %2260 = vrcp.f32 %v1063_v43  ;;  %v2251_v42 = vpop.eup %2250 }
 0x212   :  { %v2071_v1 = vpop.f32.mrb[24].mxu1 }
 0x213   :  { %967 = vrot.lane.b32.xlu0 %v2071_v1, %s2433_s6  ;;  %v894_v19 = vpop.f32.mrb[25].mxu1  ;;  %v2253_v45 = vpop.eup %2252 }
 0x214   :  { %965 = vrot.lane.b32.xlu1 %v894_v19, %s2433_s6  ;;  %v3012_v30 = vmul.f32 %v2253_v45, %v2251_v42  ;;  %v213_v42 = vld [vmem:[%s3242_s4 + $0xa0] sm:$0xff] }
 0x216   :  { %v2074_v37 = vpop.f32.mrb[26].mxu1 }
 0x217   :  { %v2255_v25 = vpop.eup %2254  ;;  %v904_v24 = vpop.f32.mrb[27].mxu1 }
 0x218   :  { %v2257_v15 = vpop.eup %2256  ;;  %971 = vrot.lane.b32.xlu1 %v2074_v37, %s2433_s6 }
 0x219   :  { %v3014_v22 = vmul.f32 %v2257_v15, %v2255_v25  ;;  %v2259_v43 = vpop.eup %2258  ;;  %v216_v25 = vld [vmem:[%s3242_s4 + $0xb8] sm:$0xff]  ;;  %s2434_s4 = smov 112  }
 0x21a   :  { %v2077_v29 = vpop.f32.mrb[28].mxu1  ;;  %v2261_v26 = vpop.eup %2260 }
 0x21b   :  { %v914_v44 = vpop.f32.mrb[29].mxu1  ;;  %v2184_v1 = vpack.c.bf16 %v3014_v22, %v3012_v30  ;;  %v3020_v19 = vmul.f32 %v2261_v26, %v2259_v43 }
 0x21c   :  { %969 = vrot.lane.b32.xlu1 %v904_v24, %s2433_s6  ;;  %973 = vrot.lane.b32.xlu0 %v914_v44, %s2433_s6  ;;  %v3262_v24 = vmov 0.0|0.0  }
 0x21d   :  { %2185 = vmatprep.subr.bf16.mxu0 %v2184_v1 }
 0x21e   :  { %2187 = vmatpush3.bf16.msra.mxu0 %v2184_v1  ;;  %v2080_v45 = vpop.f32.mrb[30].mxu1  ;;  %v3076_v1 = vadd.f32 %v2986_v49, %v2930_v35 }
 0x21f   :  { %2091 = vmatprep.subr.mxu0 %v3020_v19  ;;  %v924_v37 = vpop.f32.mrb[31].mxu1 }
 0x220   :  { %319 = vperm.xlu1 %2208, %v213_v42   ;;  %975 = vrot.lane.b32.xlu0 %v2077_v29, %s2433_s6 }
 0x222   :  { %2092 = vmatpush3.msra.mxu0 %v3020_v19  ;;  %v2083_v44 = vpop.f32.mrb[32].mxu1 }
 0x223   :  { %2094 = vmatmul.mubr.msk.f32.vlgmr.msra.gmra.mrb[18].mxu0 %vm337_vm1, %v2663_v3  ;;  %v934_v26 = vpop.f32.mrb[33].mxu1  ;;  %2192 = vmatprep.subr.bf16.mxu0 %v3262_v24  ;;  %v310_v3 = vpop.permute.xlu1 %309 }
 0x224   :  { %334 = vperm.xlu0 %2207, %v216_v25   ;;  %2096 = vmatprep.mubr.msk.f32.mxu0 %vm337_vm1, %v2672_v4  ;;  %v315_v4 = vpop.permute.xlu0 %314 }
 0x225   :  { %977 = vrot.lane.b32.xlu1 %v924_v37, %s2433_s6 }
 0x226   :  { %v2086_v29 = vpop.f32.mrb[34].mxu1 }
 0x227   :  { %2097 = vmatmul.mubr.msk.f32.gmra.mrb[20].mxu0 %vm337_vm1, %v2677_v5  ;;  %v944_v15 = vpop.f32.mrb[35].mxu1  ;;  %v325_v5 = vpop.permute.xlu1 %324 }
 0x228   :  { %2099 = vmatprep.mubr.msk.f32.mxu0 %vm337_vm1, %v2686_v6  ;;  %979 = vrot.lane.b32.xlu0 %v2080_v45, %s2433_s6  ;;  %v330_v6 = vpop.permute.xlu0 %329 }
 0x229   :  { %983 = vrot.lane.b32.xlu1 %v2083_v44, %s2433_s6 }
 0x22b   :  { %2100 = vmatmul.mubr.msk.f32.gmra.mrb[22].mxu0 %vm337_vm1, %v2691_v7 }
 0x22c   :  { %2102 = vmatprep.mubr.msk.f32.mxu0 %vm337_vm1, %v2700_v8  ;;  %985 = vrot.lane.b32.xlu0 %v944_v15, %s2433_s6  ;;  %v3062_v8 = vadd.f32 %v2978_v53, %v2924_v32 }
 0x22d   :  { %981 = vrot.lane.b32.xlu1 %v934_v26, %s2433_s6 }
 0x22f   :  { %2103 = vmatmul.mubr.msk.f32.gmra.mrb[24].mxu0 %vm337_vm1, %v2705_v9 }
 0x230   :  { %2105 = vmatprep.mubr.msk.f32.mxu0 %vm337_vm1, %v2714_v10  ;;  %987 = vrot.lane.b32.xlu0 %v2086_v29, %s2433_s6 }
 0x233   :  { %2106 = vmatmul.mubr.msk.f32.gmra.mrb[26].mxu0 %vm337_vm1, %v2719_v11  ;;  %v3066_v11 = vadd.f32 %v2980_v20, %v2928_v34  ;;  %v3081_v34 = vadd.f32 %v2982_v21, %v2932_v36 }
 0x234   :  { %2108 = vmatprep.mubr.msk.f32.mxu0 %vm337_vm1, %v2728_v12 }
 0x237   :  { %2109 = vmatmul.mubr.msk.f32.gmra.mrb[28].mxu0 %vm337_vm1, %v2733_v13  ;;  %v3071_v13 = vadd.f32 %v2976_v51, %v2926_v33  ;;  %v3086_v33 = vadd.f32 %v2984_v17, %v2936_v40 }
 0x285   :  { %v968_v9 = vpop.permute.xlu0 %967 }
 0x286   :  { %v966_v7 = vpop.permute.xlu1 %965  ;;  %v1002_v53 = vadd.f32 %v968_v9, %v3071_v13  ;;  %v3091_v9 = vadd.f32 %v2992_v52, %v310_v3 }
 0x287   :  { %v1001_v12 = vadd.f32 %v966_v7, %v3062_v8 }
 0x288   :  { %v1864_v49 = vmul.f32 -1.442695, %v1002_v53 }
 0x289   :  { %v1863_v20 = vmul.f32 -1.442695, %v1001_v12 }
 0x28a   :  { %v972_v10 = vpop.permute.xlu1 %971 }
 0x28b   :  { %v1004_v43 = vadd.f32 %v972_v10, %v3066_v11  ;;  %2262 = vpow2.f32 %v1863_v20 }
 0x28d   :  { %v1866_v37 = vmul.f32 -1.442695, %v1004_v43 }
 0x28e   :  { %v974_v32 = vpop.permute.xlu0 %973  ;;  %v970_v42 = vpop.permute.xlu1 %969 }
 0x28f   :  { %v1005_v45 = vadd.f32 %v974_v32, %v3076_v1  ;;  %v1003_v51 = vadd.f32 %v970_v42, %v3081_v34  ;;  %2264 = vpow2.f32 %v1866_v37  ;;  %v3095_v37 = vadd.f32 %v2988_v14, %v315_v4 }
 0x290   :  { %2266 = vpow2.f32 %v1864_v49 }
 0x291   :  { %v1867_v25 = vmul.f32 -1.442695, %v1005_v45  ;;  %v1865_v26 = vmul.f32 -1.442695, %v1003_v51  ;;  %v3098_v51 = vadd.f32 %v2994_v0, %v325_v5 }
 0x292   :  { %v976_v35 = vpop.permute.xlu0 %975 }
 0x293   :  { %v1006_v44 = vadd.f32 %v976_v35, %v3086_v33  ;;  %2268 = vpow2.f32 %v1867_v25 }
 0x294   :  { %2270 = vpow2.f32 %v1865_v26  ;;  %v3103_v26 = vadd.f32 %v3006_v18, %v330_v6 }
 0x295   :  { %v1868_v36 = vmul.f32 -1.442695, %v1006_v44  ;;  %v2263_v21 = vpop.eup %2262 }
 0x296   :  { %v1094_v17 = vadd.f32 1.0, %v2263_v21 }
 0x297   :  { %2272 = vpow2.f32 %v1868_v36 }
 0x298   :  { %2274 = vrcp.f32 %v1094_v17 }
 0x299   :  { %v2265_v29 = vpop.eup %2264 }
 0x29a   :  { %v2267_v40 = vpop.eup %2266  ;;  %v1112_v10 = vadd.f32 1.0, %v2265_v29 }
 0x29b   :  { %v1095_v53 = vadd.f32 1.0, %v2267_v40 }
 0x29c   :  { %2276 = vrcp.f32 %v1112_v10 }
 0x29d   :  { %v2269_v7 = vpop.eup %2268 }
 0x29e   :  { %v2271_v32 = vpop.eup %2270  ;;  %v1113_v20 = vadd.f32 1.0, %v2269_v7 }
 0x29f   :  { %v320_v15 = vpop.permute.xlu1 %319  ;;  %v1096_v35 = vadd.f32 1.0, %v2271_v32 }
 0x2a0   :  { %v3106_v14 = vadd.f32 %v2998_v28, %v320_v15 }
 0x2a1   :  { %v2273_v45 = vpop.eup %2272 }
 0x2a2   :  { %v1114_v44 = vadd.f32 1.0, %v2273_v45  ;;  %v2275_v6 = vpop.eup %2274 }
 0x2a3   :  { %v335_v12 = vpop.permute.xlu0 %334  ;;  %v978_v43 = vpop.permute.xlu1 %977 }
 0x2a4   :  { %v1007_v42 = vadd.f32 %v978_v43, %v3091_v9  ;;  %v3111_v29 = vadd.f32 %v3004_v48, %v335_v12 }
 0x2a6   :  { %2278 = vtanh.f32 %v1007_v42  ;;  %v2277_v28 = vpop.eup %2276 }
 0x2a7   :  { %v980_v52 = vpop.permute.xlu0 %979  ;;  %v984_v3 = vpop.permute.xlu1 %983  ;;  %2280 = vrcp.f32 %v1095_v53  ;;  %v1142_v42 = vmul.f32 0.0, %v2277_v28 }
 0x2a8   :  { %v1008_v49 = vadd.f32 %v980_v52, %v3095_v37  ;;  %v1010_v25 = vadd.f32 %v984_v3, %v3098_v51  ;;  %2282 = vrcp.f32 %v1113_v20 }
 0x2aa   :  { %2284 = vtanh.f32 %v1008_v49  ;;  %v1869_v0 = vmul.f32 -1.442695, %v1010_v25 }
 0x2ab   :  { %2286 = vrcp.f32 %v1096_v35  ;;  %v982_v4 = vpop.permute.xlu1 %981  ;;  %v986_v5 = vpop.permute.xlu0 %985 }
 0x2ac   :  { %2288 = vpow2.f32 %v1869_v0  ;;  %v1009_v36 = vadd.f32 %v982_v4, %v3106_v14  ;;  %v1011_v21 = vadd.f32 %v986_v5, %v3103_v26 }
 0x2ad   :  { %2290 = vrcp.f32 %v1114_v44 }
 0x2ae   :  { %2292 = vtanh.f32 %v1009_v36  ;;  %v1870_v18 = vmul.f32 -1.442695, %v1011_v21 }
 0x2af   :  { %v988_v40 = vpop.permute.xlu0 %987 }
 0x2b0   :  { %2294 = vpow2.f32 %v1870_v18  ;;  %v1012_v15 = vadd.f32 %v988_v40, %v3111_v29  ;;  %v2279_v17 = vpop.eup %2278 }
 0x2b1   :  { %v2281_v7 = vpop.eup %2280  ;;  %v1145_v10 = vmul.f32 %v2279_v17, %v2275_v6 }
 0x2b2   :  { %v1871_v43 = vmul.f32 -1.442695, %v1012_v15  ;;  %v2283_v32 = vpop.eup %2282 }
 0x2b3   :  { %v1143_v12 = vmul.f32 0.0, %v2283_v32  ;;  %v1148_v35 = vadd.f32 %v1145_v10, %v1142_v42 }
 0x2b4   :  { %v2285_v53 = vpop.eup %2284  ;;  %2296 = vpow2.f32 %v1871_v43 }
 0x2b5   :  { %v2287_v20 = vpop.eup %2286  ;;  %v1146_v45 = vmul.f32 %v2285_v53, %v2281_v7  ;;  %2298 = vtanh.f32 %v1148_v35 }
 0x2b6   :  { %v2289_v48 = vpop.eup %2288 }
 0x2b7   :  { %v2291_v52 = vpop.eup %2290  ;;  %v1133_v3 = vadd.f32 1.0, %v2289_v48  ;;  %v1149_v25 = vadd.f32 %v1146_v45, %v1143_v12 }
 0x2b8   :  { %v2293_v49 = vpop.eup %2292  ;;  %v1144_v4 = vmul.f32 0.0, %v2291_v52 }
 0x2b9   :  { %v1147_v44 = vmul.f32 %v2293_v49, %v2287_v20  ;;  %2300 = vrcp.f32 %v1133_v3 }
 0x2ba   :  { %v2295_v0 = vpop.eup %2294  ;;  %2302 = vtanh.f32 %v1149_v25 }
 0x2bb   :  { %v1134_v5 = vadd.f32 1.0, %v2295_v0  ;;  %v1150_v36 = vadd.f32 %v1147_v44, %v1144_v4 }
 0x2bd   :  { %2304 = vrcp.f32 %v1134_v5 }
 0x2be   :  { %v2297_v21 = vpop.eup %2296  ;;  %2306 = vtanh.f32 %v1150_v36 }
 0x2bf   :  { %v1135_v18 = vadd.f32 1.0, %v2297_v21  ;;  %v2299_v6 = vpop.eup %2298 }
 0x2c1   :  { %2308 = vrcp.f32 %v1135_v18 }
 0x2c2   :  { %2310 = vtanh.f32 %v3014_v22 }
 0x2c3   :  { %v2301_v40 = vpop.eup %2300  ;;  %2312 = vtanh.f32 %v3012_v30 }
 0x2c4   :  { %v2303_v28 = vpop.eup %2302  ;;  %v1154_v17 = vmul.f32 %v2301_v40, %v2299_v6  ;;  %2314 = vtanh.f32 %v3020_v19 }
 0x2c6   :  { %2316 = vtanh.f32 %v1154_v17 }
 0x2c7   :  { %v2305_v15 = vpop.eup %2304 }
 0x2c8   :  { %v3114_v7 = vmul.f32 %v2305_v15, %v2303_v28  ;;  %v2307_v10 = vpop.eup %2306 }
 0x2ca   :  { %v2209_v43 = vpack.i.bf16 %v3114_v7, %v1154_v17 }
 0x2cb   :  { %v2309_v32 = vpop.eup %2308 }
 0x2cc   :  { %2210 = vrot.lane.b32.xlu1 %v2209_v43, %s2434_s4  ;;  %v3118_v53 = vmul.f32 %v2309_v32, %v2307_v10 }
 0x2ce   :  { %1349 = vrot.lane.b32.xlu0 %v3118_v53, %s2434_s4 }
 0x2f6   :  { %v2095_v42 = vpop.f32.mrb[18].mxu0 }
 0x2f7   :  { %1296 = vrot.lane.b32.xlu0 %v2095_v42, %s2433_s6  ;;  %v1223_v20 = vpop.f32.mrb[19].mxu0 }
 0x2f8   :  { %1294 = vrot.lane.b32.xlu1 %v1223_v20, %s2433_s6 }
 0x2fa   :  { %v2098_v45 = vpop.f32.mrb[20].mxu0 }
 0x2fb   :  { %v1233_v48 = vpop.f32.mrb[21].mxu0 }
 0x2fc   :  { %1300 = vrot.lane.b32.xlu1 %v2098_v45, %s2433_s6 }
 0x2fe   :  { %v2101_v12 = vpop.f32.mrb[22].mxu0 }
 0x2ff   :  { %v1243_v52 = vpop.f32.mrb[23].mxu0 }
 0x300   :  { %1298 = vrot.lane.b32.xlu1 %v1233_v48, %s2433_s6  ;;  %1302 = vrot.lane.b32.xlu0 %v1243_v52, %s2433_s6 }
 0x302   :  { %v2104_v3 = vpop.f32.mrb[24].mxu0 }
 0x303   :  { %v1253_v49 = vpop.f32.mrb[25].mxu0 }
 0x304   :  { %1304 = vrot.lane.b32.xlu0 %v2101_v12, %s2433_s6  ;;  %1306 = vrot.lane.b32.xlu1 %v1253_v49, %s2433_s6  ;;  %v3263_v12 = vld [vmem:[#allocation3_spill] sm:$0xff] }
 0x306   :  { %v2107_v44 = vpop.f32.mrb[26].mxu0 }
 0x307   :  { %v1263_v0 = vpop.f32.mrb[27].mxu0 }
 0x308   :  { %1308 = vrot.lane.b32.xlu0 %v2104_v3, %s2433_s6  ;;  %1312 = vrot.lane.b32.xlu1 %v2107_v44, %s2433_s6  ;;  %v3264_v44 = vld [vmem:[#allocation2_spill] sm:$0xff] }
 0x30a   :  { %v2110_v4 = vpop.f32.mrb[28].mxu0 }
 0x30b   :  { %v1273_v5 = vpop.f32.mrb[29].mxu0 }
 0x30c   :  { %1310 = vrot.lane.b32.xlu1 %v1263_v0, %s2433_s6  ;;  %1314 = vrot.lane.b32.xlu0 %v1273_v5, %s2433_s6 }
 0x310   :  { %1551 = vrot.lane.b32.xlu1 %v2990_v46, %s2433_s6  ;;  %1316 = vrot.lane.b32.xlu0 %v2110_v4, %s2433_s6  ;;  %v2311_v46 = vpop.eup %2310  ;;  %v3265_v4 = vld [vmem:[#allocation6_spill] sm:$0xff] }
 0x311   :  { %v2313_v21 = vpop.eup %2312 }
 0x312   :  { %v2315_v18 = vpop.eup %2314 }
 0x313   :  { %v1672_v22 = vsel %vm1665_vm2, %v2315_v18, -inf }
 0x314   :  { %1555 = vrot.lane.b32.xlu1 %v2996_v16, %s2433_s6  ;;  %1553 = vrot.lane.b32.xlu0 %v3000_v23, %s2433_s6  ;;  %v1669_v16 = vsel %vm1665_vm2, %v2311_v46, -inf  ;;  %v1666_v23 = vsel %vm1665_vm2, %v2313_v21, -inf }
 0x318   :  { %1637 = vrot.lane.b32.xlu1 %v1149_v25, %s2434_s4  ;;  %1635 = vrot.lane.b32.xlu0 %v1148_v35, %s2434_s4  ;;  %v2317_v25 = vpop.eup %2316 }
 0x319   :  { %v1700_v19 = vsel %vm1690_vm3, %v2317_v25, -inf }
 0x31c   :  { %1639 = vrot.lane.b32.xlu0 %v1150_v36, %s2434_s4 }
 0x33b   :  { %1670 = vmax.xlane.f32.xlu0 %v1669_v16 }
 0x33c   :  { %1667 = vmax.xlane.f32.xlu1 %v1666_v23 }
 0x33e   :  { %v2211_v35 = vpop.permute.xlu1 %2210 }
 0x33f   :  { %v2213_v36 = vunpack.i.h.bf16 %v2211_v35  ;;  %v2212_v30 = vunpack.i.l.bf16 %v2211_v35  ;;  %1673 = vmax.xlane.f32.xlu0 %v1672_v22  ;;  %v3266_v35 = vld [vmem:[#allocation5_spill] sm:$0xff] }
 0x340   :  { %1701 = vmax.xlane.f32.xlu1 %v1700_v19  ;;  %v1350_v40 = vpop.permute.xlu0 %1349 }
 0x341   :  { %v2188_v6 = vpack.c.bf16 %v2213_v36, %v2212_v30  ;;  %v3267_v30 = vld [vmem:[#allocation4_spill] sm:$0xff] }
 0x343   :  { %2189 = vmatprep.subr.bf16.mxu1 %v2188_v6 }
 0x344   :  { %2191 = vmatpush3.bf16.msra.mxu1 %v2188_v6 }
 0x345   :  { %2115 = vmatprep.subr.mxu1 %v1350_v40 }
 0x348   :  { %2116 = vmatpush3.msra.mxu1 %v1350_v40 }
 0x349   :  { %2118 = vmatmul.mubr.msk.f32.vlgmr.msra.gmra.mrb[36].mxu1 %vm337_vm1, %v2841_v54 }
 0x34a   :  { %2120 = vmatprep.mubr.msk.f32.mxu1 %vm337_vm1, %v2846_v55 }
 0x34d   :  { %2121 = vmatmul.mubr.msk.f32.gmra.mrb[38].mxu1 %vm337_vm1, %v2855_v56 }
 0x34e   :  { %2123 = vmatprep.mubr.msk.f32.mxu1 %vm337_vm1, %v2860_v57 }
 0x351   :  { %2124 = vmatmul.mubr.msk.f32.gmra.mrb[40].mxu1 %vm337_vm1, %v2869_v58 }
 0x352   :  { %2126 = vmatprep.mubr.msk.f32.mxu1 %vm337_vm1, %v2874_v59 }
 0x355   :  { %2127 = vmatmul.mubr.msk.f32.gmra.mrb[42].mxu1 %vm337_vm1, %v2883_v60 }
 0x356   :  { %2129 = vmatprep.mubr.msk.f32.mxu1 %vm337_vm1, %v2888_v61 }
 0x359   :  { %2130 = vmatmul.mubr.msk.f32.gmra.mrb[44].mxu1 %vm337_vm1, %v2897_v62 }
 0x35a   :  { %2132 = vmatprep.mubr.msk.f32.mxu1 %vm337_vm1, %v2902_v63 }
 0x35d   :  { %2133 = vmatmul.mubr.msk.f32.gmra.mrb[46].mxu1 %vm337_vm1, %v2911_v2 }
 0x369   :  { %v1297_v54 = vpop.permute.xlu0 %1296 }
 0x36a   :  { %v1331_v55 = vadd.f32 %v1297_v54, %v2934_v38  ;;  %v1295_v56 = vpop.permute.xlu1 %1294 }
 0x36b   :  { %v1330_v57 = vadd.f32 %v1295_v56, %v2938_v41 }
 0x36c   :  { %v1897_v59 = vmul.f32 -1.442695, %v1331_v55 }
 0x36d   :  { %v1896_v58 = vmul.f32 -1.442695, %v1330_v57 }
 0x36e   :  { %v1301_v60 = vpop.permute.xlu1 %1300 }
 0x36f   :  { %2318 = vpow2.f32 %v1896_v58  ;;  %v1333_v61 = vadd.f32 %v1301_v60, %v2942_v47 }
 0x370   :  { %2320 = vpow2.f32 %v1897_v59 }
 0x371   :  { %v1899_v28 = vmul.f32 -1.442695, %v1333_v61 }
 0x372   :  { %v1299_v62 = vpop.permute.xlu1 %1298  ;;  %v1303_v15 = vpop.permute.xlu0 %1302 }
 0x373   :  { %2322 = vpow2.f32 %v1899_v28  ;;  %v1332_v63 = vadd.f32 %v1299_v62, %v2944_v50  ;;  %v1334_v2 = vadd.f32 %v1303_v15, %v2950_v39 }
 0x375   :  { %v1898_v17 = vmul.f32 -1.442695, %v1332_v63  ;;  %v1900_v38 = vmul.f32 -1.442695, %v1334_v2 }
 0x376   :  { %v1305_v10 = vpop.permute.xlu0 %1304  ;;  %v1307_v43 = vpop.permute.xlu1 %1306 }
 0x377   :  { %2324 = vpow2.f32 %v1898_v17  ;;  %v1335_v41 = vadd.f32 %v1305_v10, %v2948_v27  ;;  %v1336_v32 = vadd.f32 %v1307_v43, %v2956_v31 }
 0x378   :  { %2326 = vpow2.f32 %v1900_v38 }
 0x379   :  { %v2319_v47 = vpop.eup %2318  ;;  %v1901_v42 = vmul.f32 -1.442695, %v1335_v41  ;;  %2328 = vtanh.f32 %v1336_v32 }
 0x37a   :  { %v1500_v20 = vadd.f32 1.0, %v2319_v47  ;;  %v1309_v45 = vpop.permute.xlu0 %1308  ;;  %v1313_v48 = vpop.permute.xlu1 %1312 }
 0x37b   :  { %v1339_v52 = vadd.f32 %v1313_v48, %v3263_v12  ;;  %v2321_v50 = vpop.eup %2320  ;;  %2330 = vpow2.f32 %v1901_v42  ;;  %v1337_v0 = vadd.f32 %v1309_v45, %v3264_v44 }
 0x37c   :  { %2332 = vrcp.f32 %v1500_v20  ;;  %v1501_v5 = vadd.f32 1.0, %v2321_v50 }
 0x37d   :  { %v2323_v39 = vpop.eup %2322  ;;  %v1902_v3 = vmul.f32 -1.442695, %v1339_v52 }
 0x37e   :  { %v1518_v49 = vadd.f32 1.0, %v2323_v39  ;;  %v1315_v27 = vpop.permute.xlu0 %1314  ;;  %v1311_v18 = vpop.permute.xlu1 %1310 }
 0x37f   :  { %2334 = vpow2.f32 %v1902_v3  ;;  %v1340_v31 = vadd.f32 %v1315_v27, %v3265_v4  ;;  %v1338_v19 = vadd.f32 %v1311_v18, %v3267_v30 }
 0x380   :  { %2336 = vrcp.f32 %v1518_v49 }
 0x381   :  { %v2325_v46 = vpop.eup %2324  ;;  %v1903_v21 = vmul.f32 -1.442695, %v1340_v31  ;;  %2338 = vtanh.f32 %v1337_v0 }
 0x382   :  { %v2327_v16 = vpop.eup %2326  ;;  %v1317_v23 = vpop.permute.xlu0 %1316  ;;  %v1502_v36 = vadd.f32 1.0, %v2325_v46 }
 0x383   :  { %v1519_v25 = vadd.f32 1.0, %v2327_v16  ;;  %2340 = vpow2.f32 %v1903_v21  ;;  %v1341_v22 = vadd.f32 %v1317_v23, %v3266_v35  ;;  %v2329_v40 = vpop.eup %2328  ;;  %v1552_v60 = vpop.permute.xlu1 %1551 }
 0x384   :  { %2342 = vrcp.f32 %v1501_v5 }
 0x385   :  { %2344 = vrcp.f32 %v1519_v25  ;;  %v1904_v6 = vmul.f32 -1.442695, %v1341_v22  ;;  %v2331_v54 = vpop.eup %2330 }
 0x386   :  { %v2333_v55 = vpop.eup %2332  ;;  %v1520_v56 = vadd.f32 1.0, %v2331_v54  ;;  %v1554_v38 = vpop.permute.xlu0 %1553 }
 0x387   :  { %2346 = vpow2.f32 %v1904_v6  ;;  %v1563_v61 = vmul.f32 %v2333_v55, %v2329_v40  ;;  %v1556_v12 = vpop.permute.xlu1 %1555 }
 0x388   :  { %2348 = vrcp.f32 %v1502_v36 }
 0x389   :  { %v2335_v57 = vpop.eup %2334  ;;  %2350 = vtanh.f32 %v1338_v19 }
 0x38a   :  { %v2337_v58 = vpop.eup %2336  ;;  %2352 = vrcp.f32 %v1520_v56  ;;  %v1539_v59 = vadd.f32 1.0, %v2335_v57 }
 0x38b   :  { %v1560_v28 = vmul.f32 %v2337_v58, %v1552_v60  ;;  %v2339_v62 = vpop.eup %2338 }
 0x38c   :  { %2354 = vrcp.f32 %v1539_v59 }
 0x38d   :  { %v2341_v15 = vpop.eup %2340  ;;  %v1566_v63 = vadd.f32 %v1563_v61, %v1560_v28  ;;  %v3191_v61 = vpop.permute.xlu0 %1635 }
 0x38e   :  { %v2343_v2 = vpop.eup %2342  ;;  %v1540_v10 = vadd.f32 1.0, %v2341_v15 }
 0x38f   :  { %v2345_v17 = vpop.eup %2344  ;;  %2356 = vtanh.f32 %v1566_v63  ;;  %v1564_v43 = vmul.f32 %v2343_v2, %v2339_v62 }
 0x390   :  { %v1561_v41 = vmul.f32 %v2345_v17, %v1554_v38  ;;  %2358 = vrcp.f32 %v1540_v10 }
 0x391   :  { %v2347_v32 = vpop.eup %2346  ;;  %v3197_v38 = vpop.permute.xlu0 %1639 }
 0x392   :  { %v2349_v47 = vpop.eup %2348  ;;  %v1567_v42 = vadd.f32 %v1564_v43, %v1561_v41  ;;  %v1541_v48 = vadd.f32 1.0, %v2347_v32  ;;  %v3199_v41 = vpop.permute.xlu1 %1637 }
 0x393   :  { %v2351_v20 = vpop.eup %2350 }
 0x394   :  { %v2353_v45 = vpop.eup %2352  ;;  %v1565_v52 = vmul.f32 %v2351_v20, %v2349_v47  ;;  %2360 = vtanh.f32 %v1567_v42 }
 0x395   :  { %v1562_v50 = vmul.f32 %v2353_v45, %v1556_v12  ;;  %2362 = vrcp.f32 %v1541_v48 }
 0x396   :  { %v2355_v3 = vpop.eup %2354 }
 0x397   :  { %v1568_v39 = vadd.f32 %v1565_v52, %v1562_v50 }
 0x399   :  { %v2357_v49 = vpop.eup %2356  ;;  %2364 = vtanh.f32 %v1568_v39 }
 0x39a   :  { %v1572_v44 = vmul.f32 %v2357_v49, %v2355_v3  ;;  %v2359_v0 = vpop.eup %2358 }
 0x39c   :  { %2366 = vtanh.f32 %v1572_v44 }
 0x39e   :  { %v2361_v27 = vpop.eup %2360 }
 0x39f   :  { %v1573_v4 = vmul.f32 %v2361_v27, %v2359_v0  ;;  %v2363_v31 = vpop.eup %2362 }
 0x3a1   :  { %2368 = vtanh.f32 %v1573_v4 }
 0x3a3   :  { %v2365_v5 = vpop.eup %2364 }
 0x3a4   :  { %v1574_v46 = vmul.f32 %v2365_v5, %v2363_v31 }
 0x3a6   :  { %v2367_v21 = vpop.eup %2366  ;;  %2370 = vtanh.f32 %v1574_v46 }
 0x3a7   :  { %v1691_v16 = vsel %vm1690_vm3, %v2367_v21, -inf }
 0x3a8   :  { %1692 = vmax.xlane.f32.xlu0 %v1691_v16 }
 0x3ab   :  { %v2369_v18 = vpop.eup %2368 }
 0x3ac   :  { %v1694_v23 = vsel %vm1690_vm3, %v2369_v18, -inf }
 0x3ad   :  { %1695 = vmax.xlane.f32.xlu1 %v1694_v23 }
 0x3b0   :  { %v2371_v25 = vpop.eup %2370 }
 0x3b1   :  { %v1697_v35 = vsel %vm1690_vm3, %v2371_v25, -inf }
 0x3b2   :  { %1698 = vmax.xlane.f32.xlu0 %v1697_v35 }
 0x3c8   :  { %v1671_v20 = vpop.xlane.xlu0 %1670 }
 0x3c9   :  { %v1668_v52 = vpop.xlane.xlu1 %1667 }
 0x3cc   :  { %v3205_v4 = vpop.xlane.xlu0 %1673 }
 0x3cd   :  { %v3207_v21 = vpop.xlane.xlu1 %1701 }
 0x41c   :  { %v2119_v22 = vpop.f32.mrb[36].mxu1 }
 0x41d   :  { %v1480_v36 = vadd.f32 %v2119_v22, %v3071_v13  ;;  %v1420_v30 = vpop.f32.mrb[37].mxu1 }
 0x41e   :  { %v1479_v19 = vadd.f32 %v1420_v30, %v3062_v8 }
 0x41f   :  { %v1906_v6 = vmul.f32 -1.442695, %v1480_v36 }
 0x420   :  { %v1905_v40 = vmul.f32 -1.442695, %v1479_v19  ;;  %v2122_v54 = vpop.f32.mrb[38].mxu1 }
 0x421   :  { %2372 = vpow2.f32 %v1906_v6  ;;  %v1482_v55 = vadd.f32 %v2122_v54, %v3066_v11  ;;  %v1430_v56 = vpop.f32.mrb[39].mxu1 }
 0x422   :  { %2374 = vpow2.f32 %v1905_v40  ;;  %v1481_v57 = vadd.f32 %v1430_v56, %v3081_v34 }
 0x423   :  { %v1908_v58 = vmul.f32 -1.442695, %v1482_v55 }
 0x424   :  { %v1907_v59 = vmul.f32 -1.442695, %v1481_v57  ;;  %v2125_v60 = vpop.f32.mrb[40].mxu1 }
 0x425   :  { %2376 = vpow2.f32 %v1908_v58  ;;  %v1484_v13 = vadd.f32 %v2125_v60, %v3086_v33  ;;  %v1440_v28 = vpop.f32.mrb[41].mxu1 }
 0x426   :  { %2378 = vpow2.f32 %v1907_v59  ;;  %v1483_v8 = vadd.f32 %v1440_v28, %v3076_v1 }
 0x427   :  { %v1910_v62 = vmul.f32 -1.442695, %v1484_v13 }
 0x428   :  { %v1909_v15 = vmul.f32 -1.442695, %v1483_v8  ;;  %v2128_v63 = vpop.f32.mrb[42].mxu1 }
 0x429   :  { %2380 = vpow2.f32 %v1910_v62  ;;  %v1486_v11 = vadd.f32 %v2128_v63, %v3095_v37  ;;  %v1450_v2 = vpop.f32.mrb[43].mxu1 }
 0x42a   :  { %2382 = vpow2.f32 %v1909_v15  ;;  %v1485_v34 = vadd.f32 %v1450_v2, %v3091_v9 }
 0x42b   :  { %v2373_v17 = vpop.eup %2372  ;;  %2384 = vtanh.f32 %v1486_v11 }
 0x42c   :  { %v2375_v10 = vpop.eup %2374  ;;  %v1585_v43 = vadd.f32 1.0, %v2373_v17  ;;  %v2131_v33 = vpop.f32.mrb[44].mxu1  ;;  %2386 = vtanh.f32 %v1485_v34 }
 0x42d   :  { %v1584_v1 = vadd.f32 1.0, %v2375_v10  ;;  %v1488_v32 = vadd.f32 %v2131_v33, %v3098_v51  ;;  %v1460_v47 = vpop.f32.mrb[45].mxu1 }
 0x42e   :  { %2388 = vrcp.f32 %v1585_v43  ;;  %v1487_v37 = vadd.f32 %v1460_v47, %v3106_v14 }
 0x42f   :  { %v2377_v42 = vpop.eup %2376  ;;  %2390 = vrcp.f32 %v1584_v1  ;;  %v1911_v9 = vmul.f32 -1.442695, %v1488_v32 }
 0x430   :  { %v2379_v45 = vpop.eup %2378  ;;  %v1602_v48 = vadd.f32 1.0, %v2377_v42  ;;  %2392 = vtanh.f32 %v1487_v37  ;;  %v2134_v12 = vpop.f32.mrb[46].mxu1 }
 0x431   :  { %v1586_v50 = vadd.f32 1.0, %v2379_v45  ;;  %2394 = vpow2.f32 %v1911_v9  ;;  %v1490_v39 = vadd.f32 %v2134_v12, %v3111_v29  ;;  %v1470_v3 = vpop.f32.mrb[47].mxu1  ;;  %v1717_v12 = vld [vmem:[%s3246_s8] sm:$0xf] }
 0x432   :  { %2396 = vrcp.f32 %v1602_v48  ;;  %v1489_v51 = vadd.f32 %v1470_v3, %v3103_v26 }
 0x433   :  { %v2381_v49 = vpop.eup %2380  ;;  %2398 = vrcp.f32 %v1586_v50  ;;  %v1913_v14 = vmul.f32 -1.442695, %v1490_v39 }
 0x434   :  { %v2383_v44 = vpop.eup %2382  ;;  %v1604_v0 = vadd.f32 1.0, %v2381_v49  ;;  %v1912_v27 = vmul.f32 -1.442695, %v1489_v51 }
 0x435   :  { %v1603_v31 = vadd.f32 1.0, %v2383_v44  ;;  %2400 = vpow2.f32 %v1913_v14  ;;  %v2385_v5 = vpop.eup %2384  ;;  %v1693_v18 = vpop.xlane.xlu0 %1692 }
 0x436   :  { %2402 = vrcp.f32 %v1604_v0  ;;  %v2387_v46 = vpop.eup %2386  ;;  %v1710_v19 = vsel %vm1709_vm4, %v1668_v52, %v1693_v18 }
 0x437   :  { %2404 = vrcp.f32 %v1603_v31 }
 0x438   :  { %v2389_v29 = vpop.eup %2388  ;;  %2406 = vpow2.f32 %v1912_v27 }
 0x439   :  { %v2391_v16 = vpop.eup %2390  ;;  %v1648_v26 = vmul.f32 %v2389_v29, %v2385_v5 }
 0x43a   :  { %v2393_v23 = vpop.eup %2392  ;;  %v1647_v25 = vmul.f32 %v2391_v16, %v2387_v46  ;;  %v1696_v22 = vpop.xlane.xlu1 %1695 }
 0x43b   :  { %v2395_v35 = vpop.eup %2394  ;;  %v1711_v6 = vsel %vm1709_vm4, %v1671_v20, %v1696_v22 }
 0x43c   :  { %v2397_v36 = vpop.eup %2396  ;;  %v1623_v30 = vadd.f32 1.0, %v2395_v35  ;;  %v2193_v55 = vpack.c.bf16 %v1711_v6, %v1710_v19 }
 0x43d   :  { %v2399_v40 = vpop.eup %2398  ;;  %v1644_v54 = vmul.f32 %v2397_v36, %v3191_v61 }
 0x43e   :  { %v1649_v56 = vmul.f32 %v2399_v40, %v2393_v23  ;;  %2194 = vmatpush3.bf16.msra.mxu0 %v2193_v55  ;;  %2408 = vrcp.f32 %v1623_v30 }
 0x43f   :  { %v2401_v57 = vpop.eup %2400  ;;  %v1650_v58 = vadd.f32 %v1647_v25, %v1644_v54  ;;  %2195 = vmatprep.subr.bf16.mxu0 %v3262_v24  ;;  %v1699_v52 = vpop.xlane.xlu0 %1698 }
 0x440   :  { %v2403_v59 = vpop.eup %2402  ;;  %v1625_v60 = vadd.f32 1.0, %v2401_v57  ;;  %v1712_v39 = vsel %vm1709_vm4, %v3205_v4, %v1699_v52  ;;  %v1716_v4 = vld [vmem:[%s3247_s7] sm:$0xf] }
 0x441   :  { %v2405_v13 = vpop.eup %2404  ;;  %v1646_v28 = vmul.f32 %v2403_v59, %v3197_v38  ;;  %2410 = vtanh.f32 %v1650_v58 }
 0x442   :  { %v2407_v8 = vpop.eup %2406  ;;  %v1645_v62 = vmul.f32 %v2405_v13, %v3199_v41  ;;  %2412 = vrcp.f32 %v1625_v60 }
 0x443   :  { %v1652_v15 = vadd.f32 %v1649_v56, %v1646_v28  ;;  %v1624_v63 = vadd.f32 1.0, %v2407_v8 }
 0x444   :  { %v1651_v61 = vadd.f32 %v1648_v26, %v1645_v62 }
 0x445   :  { %2414 = vtanh.f32 %v1652_v15 }
 0x446   :  { %2416 = vtanh.f32 %v1651_v61 }
 0x447   :  { %2418 = vrcp.f32 %v1624_v63 }
 0x448   :  { %v2409_v11 = vpop.eup %2408 }
 0x44b   :  { %v2411_v2 = vpop.eup %2410 }
 0x44c   :  { %v1656_v34 = vmul.f32 %v2411_v2, %v2409_v11  ;;  %v2413_v17 = vpop.eup %2412 }
 0x44e   :  { %2420 = vtanh.f32 %v1656_v34 }
 0x44f   :  { %v2415_v10 = vpop.eup %2414 }
 0x450   :  { %v2417_v43 = vpop.eup %2416  ;;  %v1658_v33 = vmul.f32 %v2415_v10, %v2413_v17 }
 0x451   :  { %v2419_v38 = vpop.eup %2418 }
 0x452   :  { %2422 = vtanh.f32 %v1658_v33  ;;  %v1657_v1 = vmul.f32 %v2419_v38, %v2417_v43 }
 0x453   :  { %2424 = vtanh.f32 %v3118_v53 }
 0x454   :  { %2426 = vtanh.f32 %v1657_v1 }
 0x455   :  { %2428 = vtanh.f32 %v3114_v7  ;;  %v3268_v7 = vmov 0.0  }
 0x456   :  { %2147 = vmatprep.mubr.msk.f32.mxu0 %vm2435_vm5, %v3268_v7 }
 0x458   :  { %v2421_v41 = vpop.eup %2420 }
 0x459   :  { %v1675_v32 = vsel %vm1665_vm2, %v2421_v41, -inf }
 0x45a   :  { %1676 = vmax.xlane.f32.xlu1 %v1675_v32 }
 0x45c   :  { %v2423_v47 = vpop.eup %2422 }
 0x45d   :  { %v2425_v37 = vpop.eup %2424  ;;  %v1681_v42 = vsel %vm1665_vm2, %v2423_v47, -inf }
 0x45e   :  { %v2427_v20 = vpop.eup %2426  ;;  %1682 = vmax.xlane.f32.xlu1 %v1681_v42  ;;  %v1706_v48 = vsel %vm1690_vm3, %v2425_v37, -inf }
 0x45f   :  { %v1678_v9 = vsel %vm1665_vm2, %v2427_v20, -inf  ;;  %v2429_v45 = vpop.eup %2428 }
 0x460   :  { %1679 = vmax.xlane.f32.xlu0 %v1678_v9  ;;  %v1703_v53 = vsel %vm1690_vm3, %v2429_v45, -inf }
 0x462   :  { %1707 = vmax.xlane.f32.xlu1 %v1706_v48 }
 0x464   :  { %1704 = vmax.xlane.f32.xlu0 %v1703_v53 }
 0x47a   :  { %1720 = vperm.xlu0 %2207, %v1717_v12  }
 0x4e7   :  { %v1677_v50 = vpop.xlane.xlu1 %1676 }
 0x4e8   :  { %v1713_v3 = vsel %vm1709_vm4, %v1677_v50, %v3207_v21 }
 0x4e9   :  { %v2196_v51 = vpack.c.bf16 %v1713_v3, %v1712_v39 }
 0x4eb   :  { %v1683_v49 = vpop.xlane.xlu1 %1682  ;;  %2197 = vmatpush3.bf16.msra.mxu0 %v2196_v51 }
 0x4ec   :  { %2198 = vmatprep.subr.bf16.mxu0 %v3262_v24 }
 0x4ed   :  { %v1680_v14 = vpop.xlane.xlu0 %1679 }
 0x4ef   :  { %v1708_v44 = vpop.xlane.xlu1 %1707 }
 0x4f0   :  { %v1715_v0 = vsel %vm1709_vm4, %v1683_v49, %v1708_v44 }
 0x4f1   :  { %v1705_v27 = vpop.xlane.xlu0 %1704 }
 0x4f2   :  { %v1714_v31 = vsel %vm1709_vm4, %v1680_v14, %v1705_v27 }
 0x4f3   :  { %v2199_v5 = vpack.c.bf16 %v1715_v0, %v1714_v31 }
 0x4f5   :  { %2200 = vmatpush3.bf16.msra.mxu0 %v2199_v5 }
 0x4f8   :  { %2148 = vmatmul.mubr.msk.f32.vlgmr.msra.gmra.mrb[30].mxu0 %vm1723_vm6, %v1716_v4 }
 0x4f9   :  { %v1721_v46 = vpop.permute.xlu0 %1720 }
 0x5cb   :  { %v1793_v21 = vpop.f32.mrb[30].mxu0 }
 0x5cc   :  { %v1794_v29 = vadd.f32 %v1793_v21, %v1721_v46  ;;  %v2149_v24 = vpop.f32.mrb[31].mxu0 }
 0x5ce   :  { %1798 = vst.msk [vmem:[%s3248_s9] sm:$0xf] %vm1797_vm7, %v1794_v29 }

</bundles_post_ra>
